<compile_context>
chip_gen: v7x
topology: tpu7x:2x2x1
jax: 0.10.0
libtpu: 0.0.40
codegen_flags: <defaults>
</compile_context>

<pallas_src>
import functools
import math

import jax
import jax.numpy as jnp
from jax.experimental import pallas as pl
from jax.experimental.pallas import tpu as pltpu


# ----------------------------- model config ---------------------------------
D_MODEL = 32
NHEAD = 4
HEAD_DIM = D_MODEL // NHEAD
DIM_FF = 64
LN_EPS = 1e-5
SEQ = 8
BATCH = 2


def _layernorm(x, w, b, eps=LN_EPS):
    mu = jnp.mean(x, axis=-1, keepdims=True)
    var = jnp.mean((x - mu) ** 2, axis=-1, keepdims=True)
    return (x - mu) * jax.lax.rsqrt(var + eps) * w + b


def _encoder_layer_kernel(x_ref,
                          wq_ref, bq_ref, wk_ref, bk_ref, wv_ref, bv_ref,
                          wo_ref, bo_ref,
                          ln1w_ref, ln1b_ref, ln2w_ref, ln2b_ref,
                          w1_ref, b1_ref, w2_ref, b2_ref,
                          out_ref,
                          *, batch, seq, nhead, head_dim):
    f32 = jnp.float32
    T = batch * seq
    x = x_ref[...]                      # (T, D) f32, rows in (seq, batch) order

    # Additive same-batch mask (row t belongs to batch t % B because the input
    # was flattened from (S, B, D)).  Computed once, reused for every head.
    row_b = jax.lax.broadcasted_iota(jnp.int32, (T, T), 0) % batch
    col_b = jax.lax.broadcasted_iota(jnp.int32, (T, T), 1) % batch
    neg_bias = jnp.where(row_b == col_b, 0.0, -1e30).astype(f32)

    scale = 1.0 / math.sqrt(head_dim)

    # ---- self-attention: per-head matmuls, out-projection folded in --------
    attn = jnp.zeros((T, nhead * head_dim), f32)
    for h in range(nhead):                                   # static, unrolled
        q = jnp.dot(x, wq_ref[h], preferred_element_type=f32) + bq_ref[h]
        k = jnp.dot(x, wk_ref[h], preferred_element_type=f32) + bk_ref[h]
        v = jnp.dot(x, wv_ref[h], preferred_element_type=f32) + bv_ref[h]

        # scores over all T rows; cross-batch pairs masked to -1e30 (exp -> 0)
        s = jax.lax.dot_general(q * scale, k, (((1,), (1,)), ((), ())),
                                preferred_element_type=f32)   # (T, T)
        s = s + neg_bias
        s = s - jnp.max(s, axis=-1, keepdims=True)
        p = jnp.exp(s)
        p = p / jnp.sum(p, axis=-1, keepdims=True)            # exact softmax

        o = jnp.dot(p, v, preferred_element_type=f32)          # (T, hd)
        attn = attn + jnp.dot(o, wo_ref[h], preferred_element_type=f32)
    attn = attn + bo_ref[...]

    # dropout1 is identity (eval semantics)
    # ---- residual + LayerNorm1 (post-norm) ----------------------------------
    y = _layernorm(x + attn, ln1w_ref[...], ln1b_ref[...])

    # ---- feed-forward block --------------------------------------------------
    h1 = jnp.dot(y, w1_ref[...], preferred_element_type=f32) + b1_ref[...]
    h1 = jnp.maximum(h1, 0.0)                                  # relu
    ff = jnp.dot(h1, w2_ref[...], preferred_element_type=f32) + b2_ref[...]

    # dropout / dropout2 are identity (eval semantics)
    # ---- residual + LayerNorm2 ----------------------------------------------
    z = _layernorm(y + ff, ln2w_ref[...], ln2b_ref[...])
    out_ref[...] = z.astype(out_ref.dtype)


def transformer_encoder_layer(x_sbd, params):
    """x_sbd: (S, B, D) float32, matching PyTorch batch_first=False layout."""
    S, B, D = x_sbd.shape
    T = S * B
    H, hd = NHEAD, HEAD_DIM

    # Free contiguous reshape (no transpose, no extra HBM pass).
    x_flat = x_sbd.reshape(T, D)

    # Weight layout prep (one-time, done at weight-load time in a real model):
    # per-head (in, out) projection slabs so the kernel never lane-slices.
    wq_h = params["wq"].reshape(H, hd, D).transpose(0, 2, 1)     # (H, D, hd)
    wk_h = params["wk"].reshape(H, hd, D).transpose(0, 2, 1)
    wv_h = params["wv"].reshape(H, hd, D).transpose(0, 2, 1)
    bq_h = params["bq"].reshape(H, 1, hd)
    bk_h = params["bk"].reshape(H, 1, hd)
    bv_h = params["bv"].reshape(H, 1, hd)
    wo_h = params["wo"].T.reshape(H, hd, D)                      # (H, hd, D)
    w1_t = params["w1"].T                                        # (D, FF)
    w2_t = params["w2"].T                                        # (FF, D)

    weight_args = (
        wq_h, bq_h, wk_h, bk_h, wv_h, bv_h,
        wo_h, params["bo"],
        params["ln1_w"], params["ln1_b"], params["ln2_w"], params["ln2_b"],
        w1_t, params["b1"], w2_t, params["b2"],
    )

    kernel = functools.partial(_encoder_layer_kernel,
                               batch=B, seq=S, nhead=H, head_dim=hd)

    # No grid: single invocation, every operand resident in VMEM once
    # (no pipeline double-buffering of weights, no per-step overhead).
    vmem = pl.BlockSpec(memory_space=pltpu.MemorySpace.VMEM)
    out_flat = pl.pallas_call(
        kernel,
        out_shape=jax.ShapeDtypeStruct((T, D), x_sbd.dtype),
        in_specs=[vmem] * (1 + len(weight_args)),
        out_specs=vmem,
    )(x_flat, *weight_args)

    return out_flat.reshape(S, B, D)       # free reshape back to (S, B, D)


# ----------------------- pure-JAX reference (for check) ---------------------
def _reference(x_sbd, params):
    # Full-precision f32 reference.
    with jax.default_matmul_precision("float32"):
        x = jnp.transpose(x_sbd, (1, 0, 2)).astype(jnp.float32)   # (B, S, D)

        def ln(v, w, b):
            mu = jnp.mean(v, -1, keepdims=True)
            var = jnp.mean((v - mu) ** 2, -1, keepdims=True)
            return (v - mu) / jnp.sqrt(var + LN_EPS) * w + b

        q = x @ params["wq"].T + params["bq"]
        k = x @ params["wk"].T + params["bk"]
        v = x @ params["wv"].T + params["bv"]
        B, S, D = x.shape
        qh = q.reshape(B, S, NHEAD, HEAD_DIM).transpose(0, 2, 1, 3) / math.sqrt(HEAD_DIM)
        kh = k.reshape(B, S, NHEAD, HEAD_DIM).transpose(0, 2, 1, 3)
        vh = v.reshape(B, S, NHEAD, HEAD_DIM).transpose(0, 2, 1, 3)
        sc = jnp.einsum("bhqd,bhkd->bhqk", qh, kh)
        p = jax.nn.softmax(sc, axis=-1)
        o = jnp.einsum("bhqk,bhkd->bhqd", p, vh).transpose(0, 2, 1, 3).reshape(B, S, D)
        attn = o @ params["wo"].T + params["bo"]
        y = ln(x + attn, params["ln1_w"], params["ln1_b"])
        h1 = jnp.maximum(y @ params["w1"].T + params["b1"], 0.0)
        ff = h1 @ params["w2"].T + params["b2"]
        z = ln(y + ff, params["ln2_w"], params["ln2_b"])
        return jnp.transpose(z, (1, 0, 2))


def _init_params(key):
    ks = jax.random.split(key, 8)
    s = 0.05
    # MultiheadAttention in_proj_weight is (3D, D); split into q/k/v pieces.
    in_proj_w = jax.random.normal(ks[0], (3 * D_MODEL, D_MODEL), jnp.float32) * s
    in_proj_b = jax.random.normal(ks[1], (3 * D_MODEL,), jnp.float32) * s
    params = dict(
        wq=in_proj_w[0:D_MODEL],
        wk=in_proj_w[D_MODEL:2 * D_MODEL],
        wv=in_proj_w[2 * D_MODEL:3 * D_MODEL],
        bq=in_proj_b[0:D_MODEL].reshape(1, D_MODEL),
        bk=in_proj_b[D_MODEL:2 * D_MODEL].reshape(1, D_MODEL),
        bv=in_proj_b[2 * D_MODEL:3 * D_MODEL].reshape(1, D_MODEL),
        wo=jax.random.normal(ks[2], (D_MODEL, D_MODEL), jnp.float32) * s,
        bo=jax.random.normal(ks[3], (1, D_MODEL), jnp.float32) * s,
        ln1_w=jnp.ones((1, D_MODEL), jnp.float32),
        ln1_b=jnp.zeros((1, D_MODEL), jnp.float32),
        ln2_w=jnp.ones((1, D_MODEL), jnp.float32),
        ln2_b=jnp.zeros((1, D_MODEL), jnp.float32),
        w1=jax.random.normal(ks[4], (DIM_FF, D_MODEL), jnp.float32) * s,
        b1=jax.random.normal(ks[5], (1, DIM_FF), jnp.float32) * s,
        w2=jax.random.normal(ks[6], (D_MODEL, DIM_FF), jnp.float32) * s,
        b2=jax.random.normal(ks[7], (1, D_MODEL), jnp.float32) * s,
    )
    return params


if __name__ == "__main__":
    key = jax.random.PRNGKey(0)
    k_x, k_p = jax.random.split(key)
    # PyTorch layout (batch_first=False): (seq, batch, d_model)
    x = jax.random.normal(k_x, (SEQ, BATCH, D_MODEL), jnp.float32)
    params = _init_params(k_p)

    out = transformer_encoder_layer(x, params)
    out = jax.block_until_ready(out)

    ref = _reference(x, params)
    assert out.shape == (SEQ, BATCH, D_MODEL)
    # Pure-f32 path: typically agrees with the full-precision reference to
    # ~1e-4; gate with margin for MXU f32-pass rounding differences.
    assert jnp.allclose(out, ref, atol=2e-3, rtol=2e-3), "mismatch vs reference"
    # TODO(synk): attention-weight saving (prev_attn/curr_attn bookkeeping),
    # src_mask / key_padding_mask, and training-mode dropout are not modeled
    # (inference semantics only).
    print("KERNEL_OK")
</pallas_src>

<mosaic_0001>
module attributes {stable_mosaic.version = 11 : i64} {
  func.func @_encoder_layer_kernel(%arg0: memref<16x32xf32, #tpu.memory_space<vmem>>, %arg1: memref<4x32x8xf32, #tpu.memory_space<vmem>>, %arg2: memref<4x1x8xf32, #tpu.memory_space<vmem>>, %arg3: memref<4x32x8xf32, #tpu.memory_space<vmem>>, %arg4: memref<4x1x8xf32, #tpu.memory_space<vmem>>, %arg5: memref<4x32x8xf32, #tpu.memory_space<vmem>>, %arg6: memref<4x1x8xf32, #tpu.memory_space<vmem>>, %arg7: memref<4x8x32xf32, #tpu.memory_space<vmem>>, %arg8: memref<1x32xf32, #tpu.memory_space<vmem>>, %arg9: memref<1x32xf32, #tpu.memory_space<vmem>>, %arg10: memref<1x32xf32, #tpu.memory_space<vmem>>, %arg11: memref<1x32xf32, #tpu.memory_space<vmem>>, %arg12: memref<1x32xf32, #tpu.memory_space<vmem>>, %arg13: memref<32x64xf32, #tpu.memory_space<vmem>>, %arg14: memref<1x64xf32, #tpu.memory_space<vmem>>, %arg15: memref<64x32xf32, #tpu.memory_space<vmem>>, %arg16: memref<1x32xf32, #tpu.memory_space<vmem>>, %arg17: memref<16x32xf32, #tpu.memory_space<vmem>>) attributes {dimension_semantics = [], scalar_prefetch = 0 : i64, scratch_operands = 0 : i64, tpu.core_type = #tpu.core_type<tc>} {
    %c0 = arith.constant 0 : index
    %c0_0 = arith.constant 0 : index
    %0 = vector.load %arg0[%c0, %c0_0] : memref<16x32xf32, #tpu.memory_space<vmem>>, vector<16x32xf32>
    %1 = tpu.iota {dimensions = array<i32: 0>} : vector<16x16xi32>
    %c2_i32 = arith.constant 2 : i32
    %c0_i32 = arith.constant 0 : i32
    %2 = arith.cmpi eq, %c2_i32, %c0_i32 : i32
    %c1_i32 = arith.constant 1 : i32
    %3 = arith.select %2, %c1_i32, %c2_i32 : i32
    %4 = vector.broadcast %3 : i32 to vector<16x16xi32>
    %5 = arith.remsi %1, %4 : vector<16x16xi32>
    %c0_i32_1 = arith.constant 0 : i32
    %6 = vector.broadcast %c0_i32_1 : i32 to vector<16x16xi32>
    %7 = arith.cmpi ne, %5, %6 : vector<16x16xi32>
    %c0_i32_2 = arith.constant 0 : i32
    %8 = vector.broadcast %c0_i32_2 : i32 to vector<16x16xi32>
    %9 = arith.cmpi slt, %5, %8 : vector<16x16xi32>
    %c0_i32_3 = arith.constant 0 : i32
    %10 = arith.cmpi slt, %3, %c0_i32_3 : i32
    %11 = vector.broadcast %10 : i1 to vector<16x16xi1>
    %12 = vector.broadcast %11 : vector<16x16xi1> to vector<16x16xi1>
    %13 = arith.xori %9, %12 : vector<16x16xi1>
    %14 = arith.andi %13, %7 : vector<16x16xi1>
    %15 = vector.broadcast %3 : i32 to vector<16x16xi32>
    %16 = arith.addi %5, %15 : vector<16x16xi32>
    %17 = arith.select %14, %16, %5 : vector<16x16xi1>, vector<16x16xi32>
    %18 = tpu.iota {dimensions = array<i32: 1>} : vector<16x16xi32>
    %c2_i32_4 = arith.constant 2 : i32
    %c0_i32_5 = arith.constant 0 : i32
    %19 = arith.cmpi eq, %c2_i32_4, %c0_i32_5 : i32
    %c1_i32_6 = arith.constant 1 : i32
    %20 = arith.select %19, %c1_i32_6, %c2_i32_4 : i32
    %21 = vector.broadcast %20 : i32 to vector<16x16xi32>
    %22 = arith.remsi %18, %21 : vector<16x16xi32>
    %c0_i32_7 = arith.constant 0 : i32
    %23 = vector.broadcast %c0_i32_7 : i32 to vector<16x16xi32>
    %24 = arith.cmpi ne, %22, %23 : vector<16x16xi32>
    %c0_i32_8 = arith.constant 0 : i32
    %25 = vector.broadcast %c0_i32_8 : i32 to vector<16x16xi32>
    %26 = arith.cmpi slt, %22, %25 : vector<16x16xi32>
    %c0_i32_9 = arith.constant 0 : i32
    %27 = arith.cmpi slt, %20, %c0_i32_9 : i32
    %28 = vector.broadcast %27 : i1 to vector<16x16xi1>
    %29 = vector.broadcast %28 : vector<16x16xi1> to vector<16x16xi1>
    %30 = arith.xori %26, %29 : vector<16x16xi1>
    %31 = arith.andi %30, %24 : vector<16x16xi1>
    %32 = vector.broadcast %20 : i32 to vector<16x16xi32>
    %33 = arith.addi %22, %32 : vector<16x16xi32>
    %34 = arith.select %31, %33, %22 : vector<16x16xi1>, vector<16x16xi32>
    %35 = arith.cmpi eq, %17, %34 : vector<16x16xi32>
    %cst = arith.constant 0.000000e+00 : f32
    %cst_10 = arith.constant -1.000000e+30 : f32
    %36 = vector.broadcast %cst : f32 to vector<16x16xf32>
    %37 = vector.broadcast %cst_10 : f32 to vector<16x16xf32>
    %38 = arith.select %35, %36, %37 : vector<16x16xi1>, vector<16x16xf32>
    %cst_11 = arith.constant 0.000000e+00 : f32
    %39 = vector.broadcast %cst_11 : f32 to vector<16x32xf32>
    %c0_12 = arith.constant 0 : index
    %c0_13 = arith.constant 0 : index
    %c0_14 = arith.constant 0 : index
    %40 = vector.load %arg1[%c0_12, %c0_13, %c0_14] : memref<4x32x8xf32, #tpu.memory_space<vmem>>, vector<1x32x8xf32>
    %41 = vector.shape_cast %40 : vector<1x32x8xf32> to vector<32x8xf32>
    %cst_15 = arith.constant dense<0.000000e+00> : vector<16x8xf32>
    %42 = tpu.matmul %0, %41, %cst_15 {dimension_numbers = #tpu.dot_dimension_numbers<[1], [0], [0], [1], [0, 0, 1, 1], [], []>} : vector<16x32xf32>, vector<32x8xf32>, vector<16x8xf32> -> vector<16x8xf32>
    %c0_16 = arith.constant 0 : index
    %c0_17 = arith.constant 0 : index
    %c0_18 = arith.constant 0 : index
    %43 = vector.load %arg2[%c0_16, %c0_17, %c0_18] : memref<4x1x8xf32, #tpu.memory_space<vmem>>, vector<1x1x8xf32>
    %44 = vector.shape_cast %43 : vector<1x1x8xf32> to vector<1x8xf32>
    %45 = vector.broadcast %44 : vector<1x8xf32> to vector<16x8xf32>
    %46 = arith.addf %42, %45 : vector<16x8xf32>
    %c0_19 = arith.constant 0 : index
    %c0_20 = arith.constant 0 : index
    %c0_21 = arith.constant 0 : index
    %47 = vector.load %arg3[%c0_19, %c0_20, %c0_21] : memref<4x32x8xf32, #tpu.memory_space<vmem>>, vector<1x32x8xf32>
    %48 = vector.shape_cast %47 : vector<1x32x8xf32> to vector<32x8xf32>
    %cst_22 = arith.constant dense<0.000000e+00> : vector<16x8xf32>
    %49 = tpu.matmul %0, %48, %cst_22 {dimension_numbers = #tpu.dot_dimension_numbers<[1], [0], [0], [1], [0, 0, 1, 1], [], []>} : vector<16x32xf32>, vector<32x8xf32>, vector<16x8xf32> -> vector<16x8xf32>
    %c0_23 = arith.constant 0 : index
    %c0_24 = arith.constant 0 : index
    %c0_25 = arith.constant 0 : index
    %50 = vector.load %arg4[%c0_23, %c0_24, %c0_25] : memref<4x1x8xf32, #tpu.memory_space<vmem>>, vector<1x1x8xf32>
    %51 = vector.shape_cast %50 : vector<1x1x8xf32> to vector<1x8xf32>
    %52 = vector.broadcast %51 : vector<1x8xf32> to vector<16x8xf32>
    %53 = arith.addf %49, %52 : vector<16x8xf32>
    %c0_26 = arith.constant 0 : index
    %c0_27 = arith.constant 0 : index
    %c0_28 = arith.constant 0 : index
    %54 = vector.load %arg5[%c0_26, %c0_27, %c0_28] : memref<4x32x8xf32, #tpu.memory_space<vmem>>, vector<1x32x8xf32>
    %55 = vector.shape_cast %54 : vector<1x32x8xf32> to vector<32x8xf32>
    %cst_29 = arith.constant dense<0.000000e+00> : vector<16x8xf32>
    %56 = tpu.matmul %0, %55, %cst_29 {dimension_numbers = #tpu.dot_dimension_numbers<[1], [0], [0], [1], [0, 0, 1, 1], [], []>} : vector<16x32xf32>, vector<32x8xf32>, vector<16x8xf32> -> vector<16x8xf32>
    %c0_30 = arith.constant 0 : index
    %c0_31 = arith.constant 0 : index
    %c0_32 = arith.constant 0 : index
    %57 = vector.load %arg6[%c0_30, %c0_31, %c0_32] : memref<4x1x8xf32, #tpu.memory_space<vmem>>, vector<1x1x8xf32>
    %58 = vector.shape_cast %57 : vector<1x1x8xf32> to vector<1x8xf32>
    %59 = vector.broadcast %58 : vector<1x8xf32> to vector<16x8xf32>
    %60 = arith.addf %56, %59 : vector<16x8xf32>
    %cst_33 = arith.constant 0.353553385 : f32
    %61 = vector.broadcast %cst_33 : f32 to vector<16x8xf32>
    %62 = arith.mulf %46, %61 : vector<16x8xf32>
    %cst_34 = arith.constant dense<0.000000e+00> : vector<16x16xf32>
    %63 = tpu.matmul %62, %53, %cst_34 {dimension_numbers = #tpu.dot_dimension_numbers<[1], [1], [0], [0], [0, 0, 1, 0], [], []>} : vector<16x8xf32>, vector<16x8xf32>, vector<16x16xf32> -> vector<16x16xf32>
    %64 = arith.addf %63, %38 : vector<16x16xf32>
    %cst_35 = arith.constant dense<0xFF800000> : vector<16xf32>
    %65 = vector.multi_reduction <maximumf>, %64, %cst_35 [1] : vector<16x16xf32> to vector<16xf32>
    %66 = vector.shape_cast %65 : vector<16xf32> to vector<16x1xf32>
    %67 = vector.broadcast %66 : vector<16x1xf32> to vector<16x16xf32>
    %68 = arith.subf %64, %67 : vector<16x16xf32>
    %69 = math.exp %68 : vector<16x16xf32>
    %cst_36 = arith.constant dense<0.000000e+00> : vector<16xf32>
    %70 = vector.multi_reduction <add>, %69, %cst_36 [1] : vector<16x16xf32> to vector<16xf32>
    %71 = vector.shape_cast %70 : vector<16xf32> to vector<16x1xf32>
    %72 = vector.broadcast %71 : vector<16x1xf32> to vector<16x16xf32>
    %73 = arith.divf %69, %72 : vector<16x16xf32>
    %cst_37 = arith.constant dense<0.000000e+00> : vector<16x8xf32>
    %74 = tpu.matmul %73, %60, %cst_37 {dimension_numbers = #tpu.dot_dimension_numbers<[1], [0], [0], [1], [0, 0, 1, 1], [], []>} : vector<16x16xf32>, vector<16x8xf32>, vector<16x8xf32> -> vector<16x8xf32>
    %c0_38 = arith.constant 0 : index
    %c0_39 = arith.constant 0 : index
    %c0_40 = arith.constant 0 : index
    %75 = vector.load %arg7[%c0_38, %c0_39, %c0_40] : memref<4x8x32xf32, #tpu.memory_space<vmem>>, vector<1x8x32xf32>
    %76 = vector.shape_cast %75 : vector<1x8x32xf32> to vector<8x32xf32>
    %cst_41 = arith.constant dense<0.000000e+00> : vector<16x32xf32>
    %77 = tpu.matmul %74, %76, %cst_41 {dimension_numbers = #tpu.dot_dimension_numbers<[1], [0], [0], [1], [0, 0, 1, 1], [], []>} : vector<16x8xf32>, vector<8x32xf32>, vector<16x32xf32> -> vector<16x32xf32>
    %78 = arith.addf %39, %77 : vector<16x32xf32>
    %c1 = arith.constant 1 : index
    %c0_42 = arith.constant 0 : index
    %c0_43 = arith.constant 0 : index
    %79 = vector.load %arg1[%c1, %c0_42, %c0_43] : memref<4x32x8xf32, #tpu.memory_space<vmem>>, vector<1x32x8xf32>
    %80 = vector.shape_cast %79 : vector<1x32x8xf32> to vector<32x8xf32>
    %cst_44 = arith.constant dense<0.000000e+00> : vector<16x8xf32>
    %81 = tpu.matmul %0, %80, %cst_44 {dimension_numbers = #tpu.dot_dimension_numbers<[1], [0], [0], [1], [0, 0, 1, 1], [], []>} : vector<16x32xf32>, vector<32x8xf32>, vector<16x8xf32> -> vector<16x8xf32>
    %c1_45 = arith.constant 1 : index
    %c0_46 = arith.constant 0 : index
    %c0_47 = arith.constant 0 : index
    %82 = vector.load %arg2[%c1_45, %c0_46, %c0_47] : memref<4x1x8xf32, #tpu.memory_space<vmem>>, vector<1x1x8xf32>
    %83 = vector.shape_cast %82 : vector<1x1x8xf32> to vector<1x8xf32>
    %84 = vector.broadcast %83 : vector<1x8xf32> to vector<16x8xf32>
    %85 = arith.addf %81, %84 : vector<16x8xf32>
    %c1_48 = arith.constant 1 : index
    %c0_49 = arith.constant 0 : index
    %c0_50 = arith.constant 0 : index
    %86 = vector.load %arg3[%c1_48, %c0_49, %c0_50] : memref<4x32x8xf32, #tpu.memory_space<vmem>>, vector<1x32x8xf32>
    %87 = vector.shape_cast %86 : vector<1x32x8xf32> to vector<32x8xf32>
    %cst_51 = arith.constant dense<0.000000e+00> : vector<16x8xf32>
    %88 = tpu.matmul %0, %87, %cst_51 {dimension_numbers = #tpu.dot_dimension_numbers<[1], [0], [0], [1], [0, 0, 1, 1], [], []>} : vector<16x32xf32>, vector<32x8xf32>, vector<16x8xf32> -> vector<16x8xf32>
    %c1_52 = arith.constant 1 : index
    %c0_53 = arith.constant 0 : index
    %c0_54 = arith.constant 0 : index
    %89 = vector.load %arg4[%c1_52, %c0_53, %c0_54] : memref<4x1x8xf32, #tpu.memory_space<vmem>>, vector<1x1x8xf32>
    %90 = vector.shape_cast %89 : vector<1x1x8xf32> to vector<1x8xf32>
    %91 = vector.broadcast %90 : vector<1x8xf32> to vector<16x8xf32>
    %92 = arith.addf %88, %91 : vector<16x8xf32>
    %c1_55 = arith.constant 1 : index
    %c0_56 = arith.constant 0 : index
    %c0_57 = arith.constant 0 : index
    %93 = vector.load %arg5[%c1_55, %c0_56, %c0_57] : memref<4x32x8xf32, #tpu.memory_space<vmem>>, vector<1x32x8xf32>
    %94 = vector.shape_cast %93 : vector<1x32x8xf32> to vector<32x8xf32>
    %cst_58 = arith.constant dense<0.000000e+00> : vector<16x8xf32>
    %95 = tpu.matmul %0, %94, %cst_58 {dimension_numbers = #tpu.dot_dimension_numbers<[1], [0], [0], [1], [0, 0, 1, 1], [], []>} : vector<16x32xf32>, vector<32x8xf32>, vector<16x8xf32> -> vector<16x8xf32>
    %c1_59 = arith.constant 1 : index
    %c0_60 = arith.constant 0 : index
    %c0_61 = arith.constant 0 : index
    %96 = vector.load %arg6[%c1_59, %c0_60, %c0_61] : memref<4x1x8xf32, #tpu.memory_space<vmem>>, vector<1x1x8xf32>
    %97 = vector.shape_cast %96 : vector<1x1x8xf32> to vector<1x8xf32>
    %98 = vector.broadcast %97 : vector<1x8xf32> to vector<16x8xf32>
    %99 = arith.addf %95, %98 : vector<16x8xf32>
    %cst_62 = arith.constant 0.353553385 : f32
    %100 = vector.broadcast %cst_62 : f32 to vector<16x8xf32>
    %101 = arith.mulf %85, %100 : vector<16x8xf32>
    %cst_63 = arith.constant dense<0.000000e+00> : vector<16x16xf32>
    %102 = tpu.matmul %101, %92, %cst_63 {dimension_numbers = #tpu.dot_dimension_numbers<[1], [1], [0], [0], [0, 0, 1, 0], [], []>} : vector<16x8xf32>, vector<16x8xf32>, vector<16x16xf32> -> vector<16x16xf32>
    %103 = arith.addf %102, %38 : vector<16x16xf32>
    %cst_64 = arith.constant dense<0xFF800000> : vector<16xf32>
    %104 = vector.multi_reduction <maximumf>, %103, %cst_64 [1] : vector<16x16xf32> to vector<16xf32>
    %105 = vector.shape_cast %104 : vector<16xf32> to vector<16x1xf32>
    %106 = vector.broadcast %105 : vector<16x1xf32> to vector<16x16xf32>
    %107 = arith.subf %103, %106 : vector<16x16xf32>
    %108 = math.exp %107 : vector<16x16xf32>
    %cst_65 = arith.constant dense<0.000000e+00> : vector<16xf32>
    %109 = vector.multi_reduction <add>, %108, %cst_65 [1] : vector<16x16xf32> to vector<16xf32>
    %110 = vector.shape_cast %109 : vector<16xf32> to vector<16x1xf32>
    %111 = vector.broadcast %110 : vector<16x1xf32> to vector<16x16xf32>
    %112 = arith.divf %108, %111 : vector<16x16xf32>
    %cst_66 = arith.constant dense<0.000000e+00> : vector<16x8xf32>
    %113 = tpu.matmul %112, %99, %cst_66 {dimension_numbers = #tpu.dot_dimension_numbers<[1], [0], [0], [1], [0, 0, 1, 1], [], []>} : vector<16x16xf32>, vector<16x8xf32>, vector<16x8xf32> -> vector<16x8xf32>
    %c1_67 = arith.constant 1 : index
    %c0_68 = arith.constant 0 : index
    %c0_69 = arith.constant 0 : index
    %114 = vector.load %arg7[%c1_67, %c0_68, %c0_69] : memref<4x8x32xf32, #tpu.memory_space<vmem>>, vector<1x8x32xf32>
    %115 = vector.shape_cast %114 : vector<1x8x32xf32> to vector<8x32xf32>
    %cst_70 = arith.constant dense<0.000000e+00> : vector<16x32xf32>
    %116 = tpu.matmul %113, %115, %cst_70 {dimension_numbers = #tpu.dot_dimension_numbers<[1], [0], [0], [1], [0, 0, 1, 1], [], []>} : vector<16x8xf32>, vector<8x32xf32>, vector<16x32xf32> -> vector<16x32xf32>
    %117 = arith.addf %78, %116 : vector<16x32xf32>
    %c2 = arith.constant 2 : index
    %c0_71 = arith.constant 0 : index
    %c0_72 = arith.constant 0 : index
    %118 = vector.load %arg1[%c2, %c0_71, %c0_72] : memref<4x32x8xf32, #tpu.memory_space<vmem>>, vector<1x32x8xf32>
    %119 = vector.shape_cast %118 : vector<1x32x8xf32> to vector<32x8xf32>
    %cst_73 = arith.constant dense<0.000000e+00> : vector<16x8xf32>
    %120 = tpu.matmul %0, %119, %cst_73 {dimension_numbers = #tpu.dot_dimension_numbers<[1], [0], [0], [1], [0, 0, 1, 1], [], []>} : vector<16x32xf32>, vector<32x8xf32>, vector<16x8xf32> -> vector<16x8xf32>
    %c2_74 = arith.constant 2 : index
    %c0_75 = arith.constant 0 : index
    %c0_76 = arith.constant 0 : index
    %121 = vector.load %arg2[%c2_74, %c0_75, %c0_76] : memref<4x1x8xf32, #tpu.memory_space<vmem>>, vector<1x1x8xf32>
    %122 = vector.shape_cast %121 : vector<1x1x8xf32> to vector<1x8xf32>
    %123 = vector.broadcast %122 : vector<1x8xf32> to vector<16x8xf32>
    %124 = arith.addf %120, %123 : vector<16x8xf32>
    %c2_77 = arith.constant 2 : index
    %c0_78 = arith.constant 0 : index
    %c0_79 = arith.constant 0 : index
    %125 = vector.load %arg3[%c2_77, %c0_78, %c0_79] : memref<4x32x8xf32, #tpu.memory_space<vmem>>, vector<1x32x8xf32>
    %126 = vector.shape_cast %125 : vector<1x32x8xf32> to vector<32x8xf32>
    %cst_80 = arith.constant dense<0.000000e+00> : vector<16x8xf32>
    %127 = tpu.matmul %0, %126, %cst_80 {dimension_numbers = #tpu.dot_dimension_numbers<[1], [0], [0], [1], [0, 0, 1, 1], [], []>} : vector<16x32xf32>, vector<32x8xf32>, vector<16x8xf32> -> vector<16x8xf32>
    %c2_81 = arith.constant 2 : index
    %c0_82 = arith.constant 0 : index
    %c0_83 = arith.constant 0 : index
    %128 = vector.load %arg4[%c2_81, %c0_82, %c0_83] : memref<4x1x8xf32, #tpu.memory_space<vmem>>, vector<1x1x8xf32>
    %129 = vector.shape_cast %128 : vector<1x1x8xf32> to vector<1x8xf32>
    %130 = vector.broadcast %129 : vector<1x8xf32> to vector<16x8xf32>
    %131 = arith.addf %127, %130 : vector<16x8xf32>
    %c2_84 = arith.constant 2 : index
    %c0_85 = arith.constant 0 : index
    %c0_86 = arith.constant 0 : index
    %132 = vector.load %arg5[%c2_84, %c0_85, %c0_86] : memref<4x32x8xf32, #tpu.memory_space<vmem>>, vector<1x32x8xf32>
    %133 = vector.shape_cast %132 : vector<1x32x8xf32> to vector<32x8xf32>
    %cst_87 = arith.constant dense<0.000000e+00> : vector<16x8xf32>
    %134 = tpu.matmul %0, %133, %cst_87 {dimension_numbers = #tpu.dot_dimension_numbers<[1], [0], [0], [1], [0, 0, 1, 1], [], []>} : vector<16x32xf32>, vector<32x8xf32>, vector<16x8xf32> -> vector<16x8xf32>
    %c2_88 = arith.constant 2 : index
    %c0_89 = arith.constant 0 : index
    %c0_90 = arith.constant 0 : index
    %135 = vector.load %arg6[%c2_88, %c0_89, %c0_90] : memref<4x1x8xf32, #tpu.memory_space<vmem>>, vector<1x1x8xf32>
    %136 = vector.shape_cast %135 : vector<1x1x8xf32> to vector<1x8xf32>
    %137 = vector.broadcast %136 : vector<1x8xf32> to vector<16x8xf32>
    %138 = arith.addf %134, %137 : vector<16x8xf32>
    %cst_91 = arith.constant 0.353553385 : f32
    %139 = vector.broadcast %cst_91 : f32 to vector<16x8xf32>
    %140 = arith.mulf %124, %139 : vector<16x8xf32>
    %cst_92 = arith.constant dense<0.000000e+00> : vector<16x16xf32>
    %141 = tpu.matmul %140, %131, %cst_92 {dimension_numbers = #tpu.dot_dimension_numbers<[1], [1], [0], [0], [0, 0, 1, 0], [], []>} : vector<16x8xf32>, vector<16x8xf32>, vector<16x16xf32> -> vector<16x16xf32>
    %142 = arith.addf %141, %38 : vector<16x16xf32>
    %cst_93 = arith.constant dense<0xFF800000> : vector<16xf32>
    %143 = vector.multi_reduction <maximumf>, %142, %cst_93 [1] : vector<16x16xf32> to vector<16xf32>
    %144 = vector.shape_cast %143 : vector<16xf32> to vector<16x1xf32>
    %145 = vector.broadcast %144 : vector<16x1xf32> to vector<16x16xf32>
    %146 = arith.subf %142, %145 : vector<16x16xf32>
    %147 = math.exp %146 : vector<16x16xf32>
    %cst_94 = arith.constant dense<0.000000e+00> : vector<16xf32>
    %148 = vector.multi_reduction <add>, %147, %cst_94 [1] : vector<16x16xf32> to vector<16xf32>
    %149 = vector.shape_cast %148 : vector<16xf32> to vector<16x1xf32>
    %150 = vector.broadcast %149 : vector<16x1xf32> to vector<16x16xf32>
    %151 = arith.divf %147, %150 : vector<16x16xf32>
    %cst_95 = arith.constant dense<0.000000e+00> : vector<16x8xf32>
    %152 = tpu.matmul %151, %138, %cst_95 {dimension_numbers = #tpu.dot_dimension_numbers<[1], [0], [0], [1], [0, 0, 1, 1], [], []>} : vector<16x16xf32>, vector<16x8xf32>, vector<16x8xf32> -> vector<16x8xf32>
    %c2_96 = arith.constant 2 : index
    %c0_97 = arith.constant 0 : index
    %c0_98 = arith.constant 0 : index
    %153 = vector.load %arg7[%c2_96, %c0_97, %c0_98] : memref<4x8x32xf32, #tpu.memory_space<vmem>>, vector<1x8x32xf32>
    %154 = vector.shape_cast %153 : vector<1x8x32xf32> to vector<8x32xf32>
    %cst_99 = arith.constant dense<0.000000e+00> : vector<16x32xf32>
    %155 = tpu.matmul %152, %154, %cst_99 {dimension_numbers = #tpu.dot_dimension_numbers<[1], [0], [0], [1], [0, 0, 1, 1], [], []>} : vector<16x8xf32>, vector<8x32xf32>, vector<16x32xf32> -> vector<16x32xf32>
    %156 = arith.addf %117, %155 : vector<16x32xf32>
    %c3 = arith.constant 3 : index
    %c0_100 = arith.constant 0 : index
    %c0_101 = arith.constant 0 : index
    %157 = vector.load %arg1[%c3, %c0_100, %c0_101] : memref<4x32x8xf32, #tpu.memory_space<vmem>>, vector<1x32x8xf32>
    %158 = vector.shape_cast %157 : vector<1x32x8xf32> to vector<32x8xf32>
    %cst_102 = arith.constant dense<0.000000e+00> : vector<16x8xf32>
    %159 = tpu.matmul %0, %158, %cst_102 {dimension_numbers = #tpu.dot_dimension_numbers<[1], [0], [0], [1], [0, 0, 1, 1], [], []>} : vector<16x32xf32>, vector<32x8xf32>, vector<16x8xf32> -> vector<16x8xf32>
    %c3_103 = arith.constant 3 : index
    %c0_104 = arith.constant 0 : index
    %c0_105 = arith.constant 0 : index
    %160 = vector.load %arg2[%c3_103, %c0_104, %c0_105] : memref<4x1x8xf32, #tpu.memory_space<vmem>>, vector<1x1x8xf32>
    %161 = vector.shape_cast %160 : vector<1x1x8xf32> to vector<1x8xf32>
    %162 = vector.broadcast %161 : vector<1x8xf32> to vector<16x8xf32>
    %163 = arith.addf %159, %162 : vector<16x8xf32>
    %c3_106 = arith.constant 3 : index
    %c0_107 = arith.constant 0 : index
    %c0_108 = arith.constant 0 : index
    %164 = vector.load %arg3[%c3_106, %c0_107, %c0_108] : memref<4x32x8xf32, #tpu.memory_space<vmem>>, vector<1x32x8xf32>
    %165 = vector.shape_cast %164 : vector<1x32x8xf32> to vector<32x8xf32>
    %cst_109 = arith.constant dense<0.000000e+00> : vector<16x8xf32>
    %166 = tpu.matmul %0, %165, %cst_109 {dimension_numbers = #tpu.dot_dimension_numbers<[1], [0], [0], [1], [0, 0, 1, 1], [], []>} : vector<16x32xf32>, vector<32x8xf32>, vector<16x8xf32> -> vector<16x8xf32>
    %c3_110 = arith.constant 3 : index
    %c0_111 = arith.constant 0 : index
    %c0_112 = arith.constant 0 : index
    %167 = vector.load %arg4[%c3_110, %c0_111, %c0_112] : memref<4x1x8xf32, #tpu.memory_space<vmem>>, vector<1x1x8xf32>
    %168 = vector.shape_cast %167 : vector<1x1x8xf32> to vector<1x8xf32>
    %169 = vector.broadcast %168 : vector<1x8xf32> to vector<16x8xf32>
    %170 = arith.addf %166, %169 : vector<16x8xf32>
    %c3_113 = arith.constant 3 : index
    %c0_114 = arith.constant 0 : index
    %c0_115 = arith.constant 0 : index
    %171 = vector.load %arg5[%c3_113, %c0_114, %c0_115] : memref<4x32x8xf32, #tpu.memory_space<vmem>>, vector<1x32x8xf32>
    %172 = vector.shape_cast %171 : vector<1x32x8xf32> to vector<32x8xf32>
    %cst_116 = arith.constant dense<0.000000e+00> : vector<16x8xf32>
    %173 = tpu.matmul %0, %172, %cst_116 {dimension_numbers = #tpu.dot_dimension_numbers<[1], [0], [0], [1], [0, 0, 1, 1], [], []>} : vector<16x32xf32>, vector<32x8xf32>, vector<16x8xf32> -> vector<16x8xf32>
    %c3_117 = arith.constant 3 : index
    %c0_118 = arith.constant 0 : index
    %c0_119 = arith.constant 0 : index
    %174 = vector.load %arg6[%c3_117, %c0_118, %c0_119] : memref<4x1x8xf32, #tpu.memory_space<vmem>>, vector<1x1x8xf32>
    %175 = vector.shape_cast %174 : vector<1x1x8xf32> to vector<1x8xf32>
    %176 = vector.broadcast %175 : vector<1x8xf32> to vector<16x8xf32>
    %177 = arith.addf %173, %176 : vector<16x8xf32>
    %cst_120 = arith.constant 0.353553385 : f32
    %178 = vector.broadcast %cst_120 : f32 to vector<16x8xf32>
    %179 = arith.mulf %163, %178 : vector<16x8xf32>
    %cst_121 = arith.constant dense<0.000000e+00> : vector<16x16xf32>
    %180 = tpu.matmul %179, %170, %cst_121 {dimension_numbers = #tpu.dot_dimension_numbers<[1], [1], [0], [0], [0, 0, 1, 0], [], []>} : vector<16x8xf32>, vector<16x8xf32>, vector<16x16xf32> -> vector<16x16xf32>
    %181 = arith.addf %180, %38 : vector<16x16xf32>
    %cst_122 = arith.constant dense<0xFF800000> : vector<16xf32>
    %182 = vector.multi_reduction <maximumf>, %181, %cst_122 [1] : vector<16x16xf32> to vector<16xf32>
    %183 = vector.shape_cast %182 : vector<16xf32> to vector<16x1xf32>
    %184 = vector.broadcast %183 : vector<16x1xf32> to vector<16x16xf32>
    %185 = arith.subf %181, %184 : vector<16x16xf32>
    %186 = math.exp %185 : vector<16x16xf32>
    %cst_123 = arith.constant dense<0.000000e+00> : vector<16xf32>
    %187 = vector.multi_reduction <add>, %186, %cst_123 [1] : vector<16x16xf32> to vector<16xf32>
    %188 = vector.shape_cast %187 : vector<16xf32> to vector<16x1xf32>
    %189 = vector.broadcast %188 : vector<16x1xf32> to vector<16x16xf32>
    %190 = arith.divf %186, %189 : vector<16x16xf32>
    %cst_124 = arith.constant dense<0.000000e+00> : vector<16x8xf32>
    %191 = tpu.matmul %190, %177, %cst_124 {dimension_numbers = #tpu.dot_dimension_numbers<[1], [0], [0], [1], [0, 0, 1, 1], [], []>} : vector<16x16xf32>, vector<16x8xf32>, vector<16x8xf32> -> vector<16x8xf32>
    %c3_125 = arith.constant 3 : index
    %c0_126 = arith.constant 0 : index
    %c0_127 = arith.constant 0 : index
    %192 = vector.load %arg7[%c3_125, %c0_126, %c0_127] : memref<4x8x32xf32, #tpu.memory_space<vmem>>, vector<1x8x32xf32>
    %193 = vector.shape_cast %192 : vector<1x8x32xf32> to vector<8x32xf32>
    %cst_128 = arith.constant dense<0.000000e+00> : vector<16x32xf32>
    %194 = tpu.matmul %191, %193, %cst_128 {dimension_numbers = #tpu.dot_dimension_numbers<[1], [0], [0], [1], [0, 0, 1, 1], [], []>} : vector<16x8xf32>, vector<8x32xf32>, vector<16x32xf32> -> vector<16x32xf32>
    %195 = arith.addf %156, %194 : vector<16x32xf32>
    %c0_129 = arith.constant 0 : index
    %c0_130 = arith.constant 0 : index
    %196 = vector.load %arg8[%c0_129, %c0_130] : memref<1x32xf32, #tpu.memory_space<vmem>>, vector<1x32xf32>
    %197 = vector.broadcast %196 : vector<1x32xf32> to vector<16x32xf32>
    %198 = arith.addf %195, %197 : vector<16x32xf32>
    %199 = arith.addf %0, %198 : vector<16x32xf32>
    %c0_131 = arith.constant 0 : index
    %c0_132 = arith.constant 0 : index
    %200 = vector.load %arg9[%c0_131, %c0_132] : memref<1x32xf32, #tpu.memory_space<vmem>>, vector<1x32xf32>
    %c0_133 = arith.constant 0 : index
    %c0_134 = arith.constant 0 : index
    %201 = vector.load %arg10[%c0_133, %c0_134] : memref<1x32xf32, #tpu.memory_space<vmem>>, vector<1x32xf32>
    %cst_135 = arith.constant dense<0.000000e+00> : vector<16xf32>
    %202 = vector.multi_reduction <add>, %199, %cst_135 [1] : vector<16x32xf32> to vector<16xf32>
    %203 = vector.shape_cast %202 : vector<16xf32> to vector<16x1xf32>
    %cst_136 = arith.constant 3.200000e+01 : f32
    %204 = vector.broadcast %cst_136 : f32 to vector<16x1xf32>
    %205 = arith.divf %203, %204 : vector<16x1xf32>
    %206 = vector.broadcast %205 : vector<16x1xf32> to vector<16x32xf32>
    %207 = arith.subf %199, %206 : vector<16x32xf32>
    %208 = arith.mulf %207, %207 : vector<16x32xf32>
    %cst_137 = arith.constant dense<0.000000e+00> : vector<16xf32>
    %209 = vector.multi_reduction <add>, %208, %cst_137 [1] : vector<16x32xf32> to vector<16xf32>
    %210 = vector.shape_cast %209 : vector<16xf32> to vector<16x1xf32>
    %cst_138 = arith.constant 3.200000e+01 : f32
    %211 = vector.broadcast %cst_138 : f32 to vector<16x1xf32>
    %212 = arith.divf %210, %211 : vector<16x1xf32>
    %213 = vector.broadcast %205 : vector<16x1xf32> to vector<16x32xf32>
    %214 = arith.subf %199, %213 : vector<16x32xf32>
    %cst_139 = arith.constant 9.99999974E-6 : f32
    %215 = vector.broadcast %cst_139 : f32 to vector<16x1xf32>
    %216 = arith.addf %212, %215 : vector<16x1xf32>
    %217 = math.rsqrt %216 : vector<16x1xf32>
    %218 = vector.broadcast %217 : vector<16x1xf32> to vector<16x32xf32>
    %219 = arith.mulf %214, %218 : vector<16x32xf32>
    %220 = vector.broadcast %200 : vector<1x32xf32> to vector<16x32xf32>
    %221 = arith.mulf %219, %220 : vector<16x32xf32>
    %222 = vector.broadcast %201 : vector<1x32xf32> to vector<16x32xf32>
    %223 = arith.addf %221, %222 : vector<16x32xf32>
    %c0_140 = arith.constant 0 : index
    %c0_141 = arith.constant 0 : index
    %224 = vector.load %arg13[%c0_140, %c0_141] : memref<32x64xf32, #tpu.memory_space<vmem>>, vector<32x64xf32>
    %cst_142 = arith.constant dense<0.000000e+00> : vector<16x64xf32>
    %225 = tpu.matmul %223, %224, %cst_142 {dimension_numbers = #tpu.dot_dimension_numbers<[1], [0], [0], [1], [0, 0, 1, 1], [], []>} : vector<16x32xf32>, vector<32x64xf32>, vector<16x64xf32> -> vector<16x64xf32>
    %c0_143 = arith.constant 0 : index
    %c0_144 = arith.constant 0 : index
    %226 = vector.load %arg14[%c0_143, %c0_144] : memref<1x64xf32, #tpu.memory_space<vmem>>, vector<1x64xf32>
    %227 = vector.broadcast %226 : vector<1x64xf32> to vector<16x64xf32>
    %228 = arith.addf %225, %227 : vector<16x64xf32>
    %cst_145 = arith.constant 0.000000e+00 : f32
    %229 = vector.broadcast %cst_145 : f32 to vector<16x64xf32>
    %230 = arith.maximumf %228, %229 : vector<16x64xf32>
    %c0_146 = arith.constant 0 : index
    %c0_147 = arith.constant 0 : index
    %231 = vector.load %arg15[%c0_146, %c0_147] : memref<64x32xf32, #tpu.memory_space<vmem>>, vector<64x32xf32>
    %cst_148 = arith.constant dense<0.000000e+00> : vector<16x32xf32>
    %232 = tpu.matmul %230, %231, %cst_148 {dimension_numbers = #tpu.dot_dimension_numbers<[1], [0], [0], [1], [0, 0, 1, 1], [], []>} : vector<16x64xf32>, vector<64x32xf32>, vector<16x32xf32> -> vector<16x32xf32>
    %c0_149 = arith.constant 0 : index
    %c0_150 = arith.constant 0 : index
    %233 = vector.load %arg16[%c0_149, %c0_150] : memref<1x32xf32, #tpu.memory_space<vmem>>, vector<1x32xf32>
    %234 = vector.broadcast %233 : vector<1x32xf32> to vector<16x32xf32>
    %235 = arith.addf %232, %234 : vector<16x32xf32>
    %236 = arith.addf %223, %235 : vector<16x32xf32>
    %c0_151 = arith.constant 0 : index
    %c0_152 = arith.constant 0 : index
    %237 = vector.load %arg11[%c0_151, %c0_152] : memref<1x32xf32, #tpu.memory_space<vmem>>, vector<1x32xf32>
    %c0_153 = arith.constant 0 : index
    %c0_154 = arith.constant 0 : index
    %238 = vector.load %arg12[%c0_153, %c0_154] : memref<1x32xf32, #tpu.memory_space<vmem>>, vector<1x32xf32>
    %cst_155 = arith.constant dense<0.000000e+00> : vector<16xf32>
    %239 = vector.multi_reduction <add>, %236, %cst_155 [1] : vector<16x32xf32> to vector<16xf32>
    %240 = vector.shape_cast %239 : vector<16xf32> to vector<16x1xf32>
    %cst_156 = arith.constant 3.200000e+01 : f32
    %241 = vector.broadcast %cst_156 : f32 to vector<16x1xf32>
    %242 = arith.divf %240, %241 : vector<16x1xf32>
    %243 = vector.broadcast %242 : vector<16x1xf32> to vector<16x32xf32>
    %244 = arith.subf %236, %243 : vector<16x32xf32>
    %245 = arith.mulf %244, %244 : vector<16x32xf32>
    %cst_157 = arith.constant dense<0.000000e+00> : vector<16xf32>
    %246 = vector.multi_reduction <add>, %245, %cst_157 [1] : vector<16x32xf32> to vector<16xf32>
    %247 = vector.shape_cast %246 : vector<16xf32> to vector<16x1xf32>
    %cst_158 = arith.constant 3.200000e+01 : f32
    %248 = vector.broadcast %cst_158 : f32 to vector<16x1xf32>
    %249 = arith.divf %247, %248 : vector<16x1xf32>
    %250 = vector.broadcast %242 : vector<16x1xf32> to vector<16x32xf32>
    %251 = arith.subf %236, %250 : vector<16x32xf32>
    %cst_159 = arith.constant 9.99999974E-6 : f32
    %252 = vector.broadcast %cst_159 : f32 to vector<16x1xf32>
    %253 = arith.addf %249, %252 : vector<16x1xf32>
    %254 = math.rsqrt %253 : vector<16x1xf32>
    %255 = vector.broadcast %254 : vector<16x1xf32> to vector<16x32xf32>
    %256 = arith.mulf %251, %255 : vector<16x32xf32>
    %257 = vector.broadcast %237 : vector<1x32xf32> to vector<16x32xf32>
    %258 = arith.mulf %256, %257 : vector<16x32xf32>
    %259 = vector.broadcast %238 : vector<1x32xf32> to vector<16x32xf32>
    %260 = arith.addf %258, %259 : vector<16x32xf32>
    %c0_160 = arith.constant 0 : index
    %c0_161 = arith.constant 0 : index
    %261 = vector.load %arg17[%c0_160, %c0_161] : memref<16x32xf32, #tpu.memory_space<vmem>>, vector<16x32xf32>
    tpu.vector_store %arg17[%c0_160, %c0_161], %260 {strides = array<i32>} : memref<16x32xf32, #tpu.memory_space<vmem>>, vector<16x32xf32>,
    return
  }
}

</mosaic_0001>

<bundles_post_ra>
// kernel: tpu_custom_call.1
= control target key start
LH: loop header
LB: loop body
LE: loop exit
PB: predicated region body
PF: predicated region fallthrough
CT: control target
= control target key end

     0   :  { %s3815_s0 = inlined_call_operand.vmem [shape: f32[16,32], index: 0, kind: input, shape index: {}]   ;;  %s3816_s1 = inlined_call_operand.vmem [shape: f32[4,32,8], index: 1, kind: input, shape index: {}]   ;;  %s3817_s2 = inlined_call_operand.vmem [shape: f32[4,1,8], index: 2, kind: input, shape index: {}]   ;;  %s3818_s3 = inlined_call_operand.vmem [shape: f32[4,32,8], index: 3, kind: input, shape index: {}]   ;;  %s3819_s4 = inlined_call_operand.vmem [shape: f32[4,1,8], index: 4, kind: input, shape index: {}]   ;;  %s3820_s5 = inlined_call_operand.vmem [shape: f32[4,32,8], index: 5, kind: input, shape index: {}]   ;;  %s3821_s6 = inlined_call_operand.vmem [shape: f32[4,1,8], index: 6, kind: input, shape index: {}]   ;;  %s3822_s7 = inlined_call_operand.vmem [shape: f32[4,8,32], index: 7, kind: input, shape index: {}]   ;;  %s3823_s8 = inlined_call_operand.vmem [shape: f32[1,32], index: 8, kind: input, shape index: {}]   ;;  %s3824_s9 = inlined_call_operand.vmem [shape: f32[1,32], index: 9, kind: input, shape index: {}]   ;;  %s3825_s10 = inlined_call_operand.vmem [shape: f32[1,32], index: 10, kind: input, shape index: {}]   ;;  %s3826_s11 = inlined_call_operand.vmem [shape: f32[1,32], index: 11, kind: input, shape index: {}]   ;;  %s3827_s12 = inlined_call_operand.vmem [shape: f32[1,32], index: 12, kind: input, shape index: {}]   ;;  %s3828_s13 = inlined_call_operand.vmem [shape: f32[32,64], index: 13, kind: input, shape index: {}]   ;;  %s3829_s14 = inlined_call_operand.vmem [shape: f32[1,64], index: 14, kind: input, shape index: {}]   ;;  %s3830_s15 = inlined_call_operand.vmem [shape: f32[64,32], index: 15, kind: input, shape index: {}]   ;;  %s3831_s16 = inlined_call_operand.vmem [shape: f32[1,32], index: 16, kind: input, shape index: {}]   ;;  %s3832_s17 = inlined_call_operand.hbm [shape: f32[16,32], index: 17, kind: output, shape index: {}]  }
   0x1   :  { %3835 = sst [smem:[#allocation5_spill]] %s3815_s0 }
   0x2   :  { %3836 = sst [smem:[#allocation6_spill]] %s3816_s1 }
   0x3   :  { %s3837_s26 = sld [smem:[#allocation6_spill]]  ;;  %vm115_vm0 = vcmask 261120   ;;  %s3838_s20 = sld [smem:[#allocation5_spill]]  ;;  %v197_v7 = vld [vmem:[%s3818_s3] sm:$0xff]  ;;  %v198_v8 = vld [vmem:[%s3818_s3 + $0x8] sm:$0xff] }
   0x9   :  { %v104_v0 = vld [vmem:[%s3837_s26] sm:$0xff]  ;;  %v105_v1 = vld [vmem:[%s3837_s26 + $0x8] sm:$0xff]  ;;  %v106_v2 = vld [vmem:[%s3837_s26 + $0x10] sm:$0xff] }
   0xa   :  { %v3074_v3 = vpack.c.bf16 %v105_v1, %v104_v0  ;;  %v107_v4 = vld [vmem:[%s3837_s26 + $0x18] sm:$0xff]  ;;  %v3417_v5 = vld [vmem:[%s3838_s20] sm:$0xff] }
   0xb   :  { %v3078_v6 = vpack.c.bf16 %v107_v4, %v106_v2  ;;  %2844 = vmatprep.mubr.msk.f32.mxu1 %vm115_vm0, %v3417_v5  ;;  %2866 = vmatprep.mubr.msk.f32.mxu0 %vm115_vm0, %v3417_v5 }
   0xc   :  { %3075 = vmatprep.subr.bf16.mxu1 %v3074_v3 }
   0xd   :  { %22 = vsyncpa [#allocation3], 0  ;;  %3077 = vmatpush3.bf16.msra.mxu1 %v3074_v3  ;;  %v3082_v9 = vpack.c.bf16 %v198_v8, %v197_v7  ;;  %v199_v10 = vld [vmem:[%s3818_s3 + $0x10] sm:$0xff]  ;;  %v200_v11 = vld [vmem:[%s3818_s3 + $0x18] sm:$0xff]  ;;  %vm371_vm1 = vcmask 64512   ;;  %v59_v34 = vlaneseq  ;;  %vm459_vm5 = vcmask 130048  }
   0xe   :  { %3079 = vmatprep.subr.bf16.mxu1 %v3078_v6  ;;  %v3438_v12 = vld [vmem:[%s3838_s20 + $0x8] sm:$0xff]  ;;  %v3086_v13 = vpack.c.bf16 %v200_v11, %v199_v10  ;;  %v2577_v14 = vld [vmem:[%s3817_s2] ss:$0 sm:$0xff]  ;;  %vm3455_vm2 = vmpackc.low %vm371_vm1, %vm371_vm1  ;;  %v3308_v41 = vmov -1e+30   ;;  %vm2431_vm6 = vcmask 523264  }
   0xf   :  { %v2580_v19 = vld [vmem:[%s3819_s4] ss:$0 sm:$0xff]  ;;  %v284_v29 = vld [vmem:[%s3820_s5 + $0x8] sm:$0xff]  ;;  %v285_v30 = vld [vmem:[%s3820_s5 + $0x10] sm:$0xff]  ;;  %v60_v35 = vshrl.u32 %v59_v34, 7  ;;  %v87_v36 = vand.u32 127, %v59_v34 }
  0x10   :  { %v283_v28 = vld [vmem:[%s3820_s5] sm:$0xff]  ;;  %v286_v32 = vld [vmem:[%s3820_s5 + $0x18] sm:$0xff]  ;;  %v2601_v3 = vld [vmem:[%s3818_s3 + $0x28] sm:$0xff] }
  0x11   :  { %3081 = vmatpush3.bf16.msra.mxu1 %v3078_v6  ;;  %v3090_v31 = vpack.c.bf16 %v284_v29, %v283_v28  ;;  %v3094_v33 = vpack.c.bf16 %v286_v32, %v285_v30  ;;  %v61_v37 = vadd.s32 8, %v60_v35  ;;  %v92_v38 = vand.u32 1, %v87_v36  ;;  %v2583_v61 = vld [vmem:[%s3821_s6] ss:$0 sm:$0xff]  ;;  %v2593_v7 = vld [vmem:[%s3837_s26 + $0x28] sm:$0xff]  ;;  %v2595_v10 = vld [vmem:[%s3837_s26 + $0x38] sm:$0xff] }
  0x12   :  { %3083 = vmatprep.subr.bf16.mxu1 %v3082_v9  ;;  %v66_v39 = vand.u32 1, %v60_v35  ;;  %v2600_v2 = vld [vmem:[%s3818_s3 + $0x20] sm:$0xff]  ;;  %v2679_v24 = vld [vmem:[%s3820_s5 + $0x78] sm:$0xff] }
  0x13   :  { %3091 = vmatprep.subr.bf16.mxu0 %v3090_v31  ;;  %v73_v40 = vand.u32 1, %v61_v37  ;;  %v3116_v4 = vpack.c.bf16 %v2601_v3, %v2600_v2  ;;  %v2592_v6 = vld [vmem:[%s3837_s26 + $0x20] sm:$0xff] }
  0x14   :  { %2845 = vmatmul.mubr.msk.f32.vlgmr.msra.gmra.mrb[0].mxu1 %vm115_vm0, %v3438_v12  ;;  %3093 = vmatpush3.bf16.msra.mxu0 %v3090_v31  ;;  %vm100_vm3 = vcmp.eq.s32.totalorder %v66_v39, %v92_v38  ;;  %v3108_v8 = vpack.c.bf16 %v2593_v7, %v2592_v6  ;;  %v2605_v31 = vld [vmem:[%s3819_s4 + $0x1] ss:$0 sm:$0xff]  ;;  %v2609_v39 = vld [vmem:[%s3820_s5 + $0x28] sm:$0xff] }
  0x15   :  { %3085 = vmatpush3.bf16.msra.mxu1 %v3082_v9  ;;  %2855 = vmatprep.mubr.msk.f32.mxu1 %vm115_vm0, %v3417_v5  ;;  %vm101_vm4 = vcmp.eq.s32.totalorder %v73_v40, %v92_v38  ;;  %v3480_v42 = vsel %vm100_vm3, 0.0, %v3308_v41  ;;  %v2594_v9 = vld [vmem:[%s3837_s26 + $0x30] sm:$0xff]  ;;  %v2608_v38 = vld [vmem:[%s3820_s5 + $0x20] sm:$0xff] }
  0x16   :  { %3087 = vmatprep.subr.bf16.mxu1 %v3086_v13  ;;  %3095 = vmatprep.subr.bf16.mxu0 %v3094_v33  ;;  %v3482_v44 = vsel %vm101_vm4, 0.0, %v3308_v41  ;;  %v3112_v11 = vpack.c.bf16 %v2595_v10, %v2594_v9  ;;  %v2610_v40 = vld [vmem:[%s3820_s5 + $0x30] sm:$0xff]  ;;  %v3124_v41 = vpack.c.bf16 %v2609_v39, %v2608_v38 }
  0x18   :  { %3097 = vmatpush3.bf16.msra.mxu0 %v3094_v33 }
  0x19   :  { %3089 = vmatpush3.bf16.msra.mxu1 %v3086_v13 }
  0x1b   :  { %2867 = vmatmul.mubr.msk.f32.vlgmr.msra.gmra.mrb[0].mxu0 %vm115_vm0, %v3438_v12 }
  0x1c   :  { %2856 = vmatmul.mubr.msk.f32.vlgmr.msra.gmra.mrb[2].mxu1 %vm115_vm0, %v3438_v12 }
  0xe7   :  { %v2846_v15 = vpop.f32.mrb[0].mxu1 }
  0xe8   :  { %v188_v16 = vpop.f32.mrb[1].mxu1  ;;  %v194_v26 = vadd.f32 %v2846_v15, %v2577_v14 }
  0xe9   :  { %v189_v17 = vadd.f32 %v2577_v14, %v188_v16 }
  0xea   :  { %v370_v27 = vmul.f32 0.35355338, %v194_v26 }
  0xeb   :  { %v369_v18 = vmul.f32 0.35355338, %v189_v17  ;;  %v2602_v17 = vld [vmem:[%s3818_s3 + $0x30] sm:$0xff] }
  0xed   :  { %2873 = vmatprep.mubr.msk.f32.mxu1 %vm371_vm1, %v369_v18  ;;  %v2603_v18 = vld [vmem:[%s3818_s3 + $0x38] sm:$0xff] }
  0xee   :  { %v2868_v60 = vpop.f32.mrb[0].mxu0 }
  0xef   :  { %v2857_v20 = vpop.f32.mrb[2].mxu1  ;;  %v360_v62 = vpop.f32.mrb[1].mxu0  ;;  %v366_v63 = vadd.f32 %v2868_v60, %v2583_v61 }
  0xf0   :  { %v280_v21 = vadd.f32 %v2857_v20, %v2580_v19  ;;  %v274_v22 = vpop.f32.mrb[3].mxu1  ;;  %v361_v0 = vadd.f32 %v2583_v61, %v360_v62 }
  0xf1   :  { %v275_v23 = vadd.f32 %v2580_v19, %v274_v22  ;;  %v2597_v22 = vld [vmem:[%s3817_s2 + $0x1] ss:$0 sm:$0xff] }
  0xf2   :  { %v3104_v1 = vpack.c.bf16 %v366_v63, %v361_v0  ;;  %v2613_v63 = vld [vmem:[%s3821_s6 + $0x1] ss:$0 sm:$0xff] }
  0xf3   :  { %v3098_v25 = vpack.c.bf16 %v280_v21, %v275_v23  ;;  %v3120_v21 = vpack.c.bf16 %v2603_v18, %v2602_v17  ;;  %v2629_v17 = vld [vmem:[%s3837_s26 + $0x50] sm:$0xff]  ;;  %v2630_v18 = vld [vmem:[%s3837_s26 + $0x58] sm:$0xff] }
  0xf4   :  { %3105 = vmatprep.subr.bf16.mxu0 %v3104_v1 }
  0xf5   :  { %3100 = vmatprep.subr.msk.bf16.mxu1 %vm3455_vm2, %v3098_v25  ;;  %3107 = vmatpush3.bf16.msra.mxu0 %v3104_v1 }
  0xf6   :  { %3103 = vmatpush3.bf16.xpose.msk.msra.mxu1 %vm3455_vm2, %v3098_v25  ;;  %3117 = vmatprep.subr.bf16.mxu0 %v3116_v4 }
  0xf7   :  { %3109 = vmatprep.subr.bf16.mxu1 %v3108_v8 }
  0xfd   :  { %2874 = vmatmul.mubr.msk.f32.vlgmr.msra.gmra.mrb[4].mxu1 %vm371_vm1, %v370_v27 }
  0xfe   :  { %2891 = vmatprep.mubr.msk.f32.mxu1 %vm115_vm0, %v3417_v5  ;;  %3111 = vmatpush3.bf16.msra.mxu1 %v3108_v8 }
  0xff   :  { %3113 = vmatprep.subr.bf16.mxu1 %v3112_v11 }
 0x102   :  { %3115 = vmatpush3.bf16.msra.mxu1 %v3112_v11 }
 0x103   :  { %3125 = vmatprep.subr.bf16.mxu1 %v3124_v41 }
 0x105   :  { %2892 = vmatmul.mubr.msk.f32.vlgmr.msra.gmra.mrb[6].mxu1 %vm115_vm0, %v3438_v12 }
 0x106   :  { %2913 = vmatprep.mubr.msk.f32.mxu1 %vm115_vm0, %v3417_v5  ;;  %3127 = vmatpush3.bf16.msra.mxu1 %v3124_v41 }
 0x1d0   :  { %v2875_v43 = vpop.f32.mrb[4].mxu1 }
 0x1d1   :  { %v450_v45 = vpop.f32.mrb[5].mxu1  ;;  %v456_v47 = vadd.f32 %v2875_v43, %v3482_v44  ;;  %v2611_v43 = vld [vmem:[%s3820_s5 + $0x38] sm:$0xff] }
 0x1d2   :  { %v451_v46 = vadd.f32 %v450_v45, %v3480_v42  ;;  %v3128_v45 = vpack.c.bf16 %v2611_v43, %v2610_v40  ;;  %v2643_v43 = vld [vmem:[%s3820_s5 + $0x40] sm:$0xff] }
 0x1d3   :  { %v463_v49 = vsel %vm459_vm5, %v456_v47, -inf }
 0x1d4   :  { %v460_v48 = vsel %vm459_vm5, %v451_v46, -inf  ;;  %3129 = vmatprep.subr.bf16.mxu1 %v3128_v45 }
 0x1d5   :  { %461 = vmax.xlane.f32.xlu0 %v460_v48  ;;  %3131 = vmatpush3.bf16.msra.mxu1 %v3128_v45  ;;  %v2644_v45 = vld [vmem:[%s3820_s5 + $0x48] sm:$0xff] }
 0x1d8   :  { %v2893_v23 = vpop.f32.mrb[6].mxu1  ;;  %2914 = vmatmul.mubr.msk.f32.vlgmr.msra.gmra.mrb[8].mxu1 %vm115_vm0, %v3438_v12 }
 0x1d9   :  { %464 = vmax.xlane.f32.xlu0 %v463_v49  ;;  %v649_v25 = vadd.f32 %v2893_v23, %v2597_v22  ;;  %v643_v26 = vpop.f32.mrb[7].mxu1 }
 0x1da   :  { %v644_v27 = vadd.f32 %v2597_v22, %v643_v26  ;;  %v2637_v26 = vld [vmem:[%s3818_s3 + $0x50] sm:$0xff] }
 0x1db   :  { %v829_v37 = vmul.f32 0.35355338, %v649_v25 }
 0x1dc   :  { %v828_v28 = vmul.f32 0.35355338, %v644_v27  ;;  %v2638_v27 = vld [vmem:[%s3818_s3 + $0x58] sm:$0xff] }
 0x262   :  { %v462_v50 = vpop.xlane.xlu0 %461 }
 0x263   :  { %v466_v51 = vsub.f32 %v451_v46, %v462_v50 }
 0x265   :  { %v468_v52 = vmul.f32 1.442695, %v466_v51 }
 0x266   :  { %v465_v53 = vpop.xlane.xlu0 %464 }
 0x267   :  { %3244 = vpow2.f32 %v468_v52  ;;  %v467_v54 = vsub.f32 %v456_v47, %v465_v53 }
 0x269   :  { %v470_v55 = vmul.f32 1.442695, %v467_v54 }
 0x26b   :  { %3246 = vpow2.f32 %v470_v55 }
 0x271   :  { %v3245_v56 = vpop.eup %3244 }
 0x272   :  { %v472_v57 = vsel %vm459_vm5, %v3245_v56, 0.0 }
 0x273   :  { %473 = vadd.xlane.f32.xlu1 %v472_v57 }
 0x275   :  { %v3247_v58 = vpop.eup %3246 }
 0x276   :  { %v475_v59 = vsel %vm459_vm5, %v3247_v58, 0.0 }
 0x277   :  { %476 = vadd.xlane.f32.xlu1 %v475_v59 }
 0x2ab   :  { %v2915_v62 = vpop.f32.mrb[8].mxu1 }
 0x2ac   :  { %v819_v0 = vpop.f32.mrb[9].mxu1  ;;  %v825_v1 = vadd.f32 %v2915_v62, %v2613_v63 }
 0x2ad   :  { %v820_v2 = vadd.f32 %v2613_v63, %v819_v0 }
 0x2af   :  { %v3138_v3 = vpack.c.bf16 %v825_v1, %v820_v2 }
 0x2b1   :  { %3139 = vmatprep.subr.bf16.mxu1 %v3138_v3 }
 0x2b2   :  { %3141 = vmatpush3.bf16.msra.mxu1 %v3138_v3  ;;  %v2648_v3 = vld [vmem:[%s3821_s6 + $0x2] ss:$0 sm:$0xff] }
 0x300   :  { %v474_v13 = vpop.xlane.xlu1 %473 }
 0x301   :  { %3248 = vrcp.f32 %v474_v13  ;;  %v563_v13 = vld [vmem:[%s3822_s7] sm:$0xff] }
 0x304   :  { %v477_v14 = vpop.xlane.xlu1 %476 }
 0x305   :  { %3250 = vrcp.f32 %v477_v14  ;;  %v2627_v14 = vld [vmem:[%s3837_s26 + $0x40] sm:$0xff] }
 0x30b   :  { %v3249_v15 = vpop.eup %3248 }
 0x30c   :  { %v479_v16 = vmul.f32 %v3249_v15, %v3245_v56  ;;  %v2628_v15 = vld [vmem:[%s3837_s26 + $0x48] sm:$0xff] }
 0x30e   :  { %2880 = vmatprep.mubr.msk.f32.mxu0 %vm459_vm5, %v479_v16  ;;  %v3142_v16 = vpack.c.bf16 %v2628_v15, %v2627_v14 }
 0x30f   :  { %v3251_v19 = vpop.eup %3250 }
 0x310   :  { %v481_v20 = vmul.f32 %v3251_v19, %v3247_v58  ;;  %3143 = vmatprep.subr.bf16.mxu1 %v3142_v16  ;;  %v3146_v19 = vpack.c.bf16 %v2630_v18, %v2629_v17  ;;  %v2668_v17 = vld [vmem:[%s3818_s3 + $0x60] sm:$0xff]  ;;  %v2669_v18 = vld [vmem:[%s3818_s3 + $0x68] sm:$0xff] }
 0x312   :  { %2881 = vmatmul.mubr.msk.f32.vlgmr.msra.gmra.mrb[2].mxu0 %vm459_vm5, %v481_v20  ;;  %v2635_v20 = vld [vmem:[%s3818_s3 + $0x40] sm:$0xff] }
 0x313   :  { %3119 = vmatpush3.bf16.msra.mxu0 %v3116_v4  ;;  %2902 = vmatprep.mubr.msk.f32.mxu0 %vm115_vm0, %v3417_v5  ;;  %v2622_v4 = vld [vmem:[%s3822_s7 + $0x8] sm:$0xff] }
 0x314   :  { %3121 = vmatprep.subr.bf16.mxu0 %v3120_v21 }
 0x317   :  { %3123 = vmatpush3.bf16.msra.mxu0 %v3120_v21  ;;  %v2636_v21 = vld [vmem:[%s3818_s3 + $0x48] sm:$0xff] }
 0x318   :  { %v3150_v25 = vpack.c.bf16 %v2636_v21, %v2635_v20  ;;  %v2660_v20 = vld [vmem:[%s3837_s26 + $0x60] sm:$0xff]  ;;  %v2661_v21 = vld [vmem:[%s3837_s26 + $0x68] sm:$0xff] }
 0x31a   :  { %2903 = vmatmul.mubr.msk.f32.vlgmr.msra.gmra.mrb[4].mxu0 %vm115_vm0, %v3438_v12 }
 0x31b   :  { %2920 = vmatprep.mubr.msk.f32.mxu0 %vm371_vm1, %v828_v28  ;;  %v3154_v28 = vpack.c.bf16 %v2638_v27, %v2637_v26  ;;  %v2670_v27 = vld [vmem:[%s3818_s3 + $0x70] sm:$0xff] }
 0x3e5   :  { %v3531_v29 = vpop.f32.mrb[2].mxu0 }
 0x3e6   :  { %v3533_v30 = vpop.f32.mrb[3].mxu0 }
 0x3ed   :  { %v2904_v32 = vpop.f32.mrb[4].mxu0 }
 0x3ee   :  { %v737_v33 = vadd.f32 %v2904_v32, %v2605_v31  ;;  %v731_v34 = vpop.f32.mrb[5].mxu0 }
 0x3ef   :  { %v732_v35 = vadd.f32 %v2605_v31, %v731_v34 }
 0x3f1   :  { %v3132_v36 = vpack.c.bf16 %v737_v33, %v732_v35 }
 0x3f3   :  { %3134 = vmatprep.subr.msk.bf16.mxu0 %vm3455_vm2, %v3132_v36 }
 0x3f4   :  { %3137 = vmatpush3.bf16.xpose.msk.msra.mxu0 %vm3455_vm2, %v3132_v36 }
 0x3f5   :  { %2930 = vmatprep.subr.mxu0 %v2622_v4 }
 0x3fb   :  { %2921 = vmatmul.mubr.msk.f32.vlgmr.msra.gmra.mrb[6].mxu0 %vm371_vm1, %v829_v37 }
 0x3fc   :  { %2931 = vmatpush3.msra.mxu0 %v2622_v4 }
 0x3fd   :  { %2935 = vmatprep.subr.mxu0 %v563_v13 }
 0x4ce   :  { %v2922_v46 = vpop.f32.mrb[6].mxu0 }
 0x4cf   :  { %v914_v47 = vadd.f32 %v2922_v46, %v3482_v44  ;;  %v908_v48 = vpop.f32.mrb[7].mxu0  ;;  %v2645_v46 = vld [vmem:[%s3820_s5 + $0x50] sm:$0xff] }
 0x4d0   :  { %v909_v49 = vadd.f32 %v908_v48, %v3480_v42  ;;  %v2646_v48 = vld [vmem:[%s3820_s5 + $0x58] sm:$0xff] }
 0x4d1   :  { %v920_v50 = vsel %vm459_vm5, %v914_v47, -inf }
 0x4d2   :  { %921 = vmax.xlane.f32.xlu1 %v920_v50  ;;  %v917_v51 = vsel %vm459_vm5, %v909_v49, -inf }
 0x4d3   :  { %918 = vmax.xlane.f32.xlu0 %v917_v51 }
 0x55f   :  { %v922_v52 = vpop.xlane.xlu1 %921 }
 0x560   :  { %v924_v53 = vsub.f32 %v914_v47, %v922_v52  ;;  %v919_v54 = vpop.xlane.xlu0 %918  ;;  %v3158_v47 = vpack.c.bf16 %v2644_v45, %v2643_v43 }
 0x561   :  { %v923_v55 = vsub.f32 %v909_v49, %v919_v54  ;;  %v3162_v49 = vpack.c.bf16 %v2646_v48, %v2645_v46  ;;  %v2677_v48 = vld [vmem:[%s3820_s5 + $0x68] sm:$0xff] }
 0x562   :  { %v927_v56 = vmul.f32 1.442695, %v924_v53 }
 0x563   :  { %v925_v57 = vmul.f32 1.442695, %v923_v55 }
 0x564   :  { %3252 = vpow2.f32 %v927_v56 }
 0x565   :  { %3254 = vpow2.f32 %v925_v57 }
 0x56e   :  { %v3253_v58 = vpop.eup %3252 }
 0x56f   :  { %v3255_v59 = vpop.eup %3254  ;;  %v932_v60 = vsel %vm459_vm5, %v3253_v58, 0.0 }
 0x570   :  { %933 = vadd.xlane.f32.xlu1 %v932_v60  ;;  %v929_v61 = vsel %vm459_vm5, %v3255_v59, 0.0 }
 0x571   :  { %930 = vadd.xlane.f32.xlu0 %v929_v61 }
 0x5fd   :  { %v934_v6 = vpop.xlane.xlu1 %933 }
 0x5fe   :  { %3256 = vrcp.f32 %v934_v6  ;;  %v931_v7 = vpop.xlane.xlu0 %930 }
 0x5ff   :  { %3258 = vrcp.f32 %v931_v7 }
 0x608   :  { %v3257_v8 = vpop.eup %3256 }
 0x609   :  { %v3259_v9 = vpop.eup %3258  ;;  %v938_v11 = vmul.f32 %v3257_v8, %v3253_v58 }
 0x60a   :  { %v936_v10 = vmul.f32 %v3259_v9, %v3255_v59  ;;  %v2657_v9 = vld [vmem:[%s3822_s7 + $0x10] sm:$0xff] }
 0x60c   :  { %2927 = vmatprep.mubr.msk.f32.mxu1 %vm459_vm5, %v936_v10 }
 0x60d   :  { %2928 = vmatmul.mubr.msk.f32.vlgmr.msra.gmra.mrb[10].mxu1 %vm459_vm5, %v938_v11 }
 0x60e   :  { %2948 = vmatprep.mubr.msk.f32.mxu1 %vm115_vm0, %v3417_v5  ;;  %3145 = vmatpush3.bf16.msra.mxu1 %v3142_v16 }
 0x60f   :  { %3147 = vmatprep.subr.bf16.mxu1 %v3146_v19 }
 0x612   :  { %3149 = vmatpush3.bf16.msra.mxu1 %v3146_v19  ;;  %v3184_v19 = vpack.c.bf16 %v2669_v18, %v2668_v17 }
 0x613   :  { %3159 = vmatprep.subr.bf16.mxu1 %v3158_v47 }
 0x615   :  { %2949 = vmatmul.mubr.msk.f32.vlgmr.msra.gmra.mrb[12].mxu1 %vm115_vm0, %v3438_v12 }
 0x616   :  { %2970 = vmatprep.mubr.msk.f32.mxu1 %vm115_vm0, %v3417_v5  ;;  %3161 = vmatpush3.bf16.msra.mxu1 %v3158_v47  ;;  %v2676_v47 = vld [vmem:[%s3820_s5 + $0x60] sm:$0xff] }
 0x617   :  { %3163 = vmatprep.subr.bf16.mxu1 %v3162_v49 }
 0x61a   :  { %3165 = vmatpush3.bf16.msra.mxu1 %v3162_v49  ;;  %v2678_v49 = vld [vmem:[%s3820_s5 + $0x70] sm:$0xff] }
 0x61d   :  { %2971 = vmatmul.mubr.msk.f32.vlgmr.msra.gmra.mrb[14].mxu1 %vm115_vm0, %v3438_v12 }
 0x6e0   :  { %v2929_v22 = vpop.f32.mrb[10].mxu1 }
 0x6e1   :  { %v1011_v23 = vpop.f32.mrb[11].mxu1 }
 0x6e2   :  { %2932 = vmatprep.mubr.msk.f32.mxu0 %vm371_vm1, %v1011_v23  ;;  %v2662_v23 = vld [vmem:[%s3837_s26 + $0x70] sm:$0xff] }
 0x6e3   :  { %2933 = vmatmul.mubr.msk.f32.vlgmr.msra.gmra.mrb[8].mxu0 %vm371_vm1, %v2929_v22  ;;  %v3176_v22 = vpack.c.bf16 %v2661_v21, %v2660_v20 }
 0x6e4   :  { %2936 = vmatpush3.msra.mxu0 %v563_v13  ;;  %2937 = vmatprep.mubr.msk.f32.mxu0 %vm371_vm1, %v3533_v30  ;;  %v2632_v30 = vld [vmem:[%s3817_s2 + $0x2] ss:$0 sm:$0xff] }
 0x6e5   :  { %3151 = vmatprep.subr.bf16.mxu0 %v3150_v25 }
 0x6e8   :  { %v2950_v31 = vpop.f32.mrb[12].mxu1 }
 0x6e9   :  { %v1269_v32 = vadd.f32 %v2950_v31, %v2632_v30  ;;  %v1263_v33 = vpop.f32.mrb[13].mxu1 }
 0x6ea   :  { %v1264_v34 = vadd.f32 %v2632_v30, %v1263_v33  ;;  %v2665_v33 = vld [vmem:[%s3817_s2 + $0x3] ss:$0 sm:$0xff]  ;;  %s3309_s2 = smov [#allocation2]  }
 0x6eb   :  { %2938 = vmatmul.mubr.msk.f32.vlgmr.msra.gmra.mrb[8].mxu0 %vm371_vm1, %v3531_v29  ;;  %v2640_v29 = vld [vmem:[%s3819_s4 + $0x2] ss:$0 sm:$0xff]  ;;  %v1449_v41 = vmul.f32 0.35355338, %v1269_v32  ;;  %s2566_s18 = sshll.u32 %s3309_s2, 4  ;;  %s2567_s18 = int_to_ptr.vmem [resolvable:$true] %s2566_s18 }
 0x6ec   :  { %3153 = vmatpush3.bf16.msra.mxu0 %v3150_v25  ;;  %2959 = vmatprep.mubr.msk.f32.mxu0 %vm115_vm0, %v3417_v5  ;;  %v1448_v35 = vmul.f32 0.35355338, %v1264_v34  ;;  %v2663_v25 = vld [vmem:[%s3837_s26 + $0x78] sm:$0xff]  ;;  %s3284_s19 = scalar_lea.vmem %s2567_s18, 256  ;;  %p3289_p1 = scmp.lt.s32.totalorder %s2567_s18, %s2567_s18 }
 0x6ed   :  { %3155 = vmatprep.subr.bf16.mxu0 %v3154_v28  ;;  %v3180_v26 = vpack.c.bf16 %v2663_v25, %v2662_v23  ;;  %p3285_p0 = scmp.ne.s32.totalorder %s2567_s18, %s3284_s19  ;;  %p3290_p2 = scmp.lt.s32.totalorder %s3284_s19, %s3284_s19 }
 0x6ef   :  { %p3291_p3 = por %p3290_p2, %p3289_p1 }
 0x6f0   :  { %3157 = vmatpush3.bf16.msra.mxu0 %v3154_v28  ;;  %v2972_v2 = vpop.f32.mrb[14].mxu1  ;;  %v2671_v28 = vld [vmem:[%s3818_s3 + $0x78] sm:$0xff] }
 0x6f1   :  { %v1439_v4 = vpop.f32.mrb[15].mxu1  ;;  %v1445_v6 = vadd.f32 %v2972_v2, %v2648_v3  ;;  %v3188_v32 = vpack.c.bf16 %v2671_v28, %v2670_v27  ;;  %p3292_p4 = pnand %p3291_p3, %p3285_p0 }
 0x6f2   :  { %v1440_v7 = vadd.f32 %v2648_v3, %v1439_v4  ;;  %v2681_v3 = vld [vmem:[%s3821_s6 + $0x3] ss:$0 sm:$0xff] }
 0x6f3   :  { %2960 = vmatmul.mubr.msk.f32.vlgmr.msra.gmra.mrb[10].mxu0 %vm115_vm0, %v3438_v12 }
 0x6f4   :  { %2977 = vmatprep.mubr.msk.f32.mxu0 %vm371_vm1, %v1448_v35  ;;  %v3172_v8 = vpack.c.bf16 %v1445_v6, %v1440_v7 }
 0x6f6   :  { %3173 = vmatprep.subr.bf16.mxu1 %v3172_v8 }
 0x6f7   :  { %3175 = vmatpush3.bf16.msra.mxu1 %v3172_v8 }
 0x6f8   :  { %3177 = vmatprep.subr.bf16.mxu1 %v3176_v22 }
 0x7c6   :  { %v2961_v36 = vpop.f32.mrb[10].mxu0 }
 0x7c7   :  { %v1357_v37 = vadd.f32 %v2961_v36, %v2640_v29  ;;  %v1351_v38 = vpop.f32.mrb[11].mxu0 }
 0x7c8   :  { %v1352_v39 = vadd.f32 %v2640_v29, %v1351_v38  ;;  %v2673_v38 = vld [vmem:[%s3819_s4 + $0x3] ss:$0 sm:$0xff] }
 0x7ca   :  { %v3166_v40 = vpack.c.bf16 %v1357_v37, %v1352_v39 }
 0x7cc   :  { %3168 = vmatprep.subr.msk.bf16.mxu0 %vm3455_vm2, %v3166_v40 }
 0x7cd   :  { %3171 = vmatpush3.bf16.xpose.msk.msra.mxu0 %vm3455_vm2, %v3166_v40 }
 0x7ce   :  { %2987 = vmatprep.subr.mxu0 %v2657_v9 }
 0x7d4   :  { %2978 = vmatmul.mubr.msk.f32.vlgmr.msra.gmra.mrb[12].mxu0 %vm371_vm1, %v1449_v41 }
 0x7d5   :  { %2988 = vmatpush3.msra.mxu0 %v2657_v9  ;;  %v2690_v9 = vld [vmem:[%s3822_s7 + $0x18] sm:$0xff] }
 0x7d6   :  { %3185 = vmatprep.subr.bf16.mxu0 %v3184_v19 }
 0x8a7   :  { %v2979_v50 = vpop.f32.mrb[12].mxu0 }
 0x8a8   :  { %v1534_v51 = vadd.f32 %v2979_v50, %v3482_v44  ;;  %v1528_v52 = vpop.f32.mrb[13].mxu0  ;;  %v3192_v50 = vpack.c.bf16 %v2677_v48, %v2676_v47  ;;  %v2418_v47 = vld [vmem:[%s3830_s15 + $0x10] sm:$0xff] }
 0x8a9   :  { %v1529_v53 = vadd.f32 %v1528_v52, %v3480_v42 }
 0x8aa   :  { %v1540_v54 = vsel %vm459_vm5, %v1534_v51, -inf }
 0x8ab   :  { %1541 = vmax.xlane.f32.xlu1 %v1540_v54  ;;  %v1537_v55 = vsel %vm459_vm5, %v1529_v53, -inf }
 0x8ac   :  { %1538 = vmax.xlane.f32.xlu0 %v1537_v55 }
 0x938   :  { %v1542_v56 = vpop.xlane.xlu1 %1541 }
 0x939   :  { %v1544_v57 = vsub.f32 %v1534_v51, %v1542_v56  ;;  %v1539_v58 = vpop.xlane.xlu0 %1538  ;;  %v3196_v51 = vpack.c.bf16 %v2679_v24, %v2678_v49  ;;  %v2419_v49 = vld [vmem:[%s3830_s15 + $0x18] sm:$0xff]  ;;  %v2420_v24 = vld [vmem:[%s3830_s15 + $0x20] sm:$0xff] }
 0x93a   :  { %v1543_v59 = vsub.f32 %v1529_v53, %v1539_v58 }
 0x93b   :  { %v1547_v60 = vmul.f32 1.442695, %v1544_v57 }
 0x93c   :  { %v1545_v61 = vmul.f32 1.442695, %v1543_v59 }
 0x93d   :  { %3260 = vpow2.f32 %v1547_v60 }
 0x93e   :  { %3262 = vpow2.f32 %v1545_v61 }
 0x947   :  { %v3261_v62 = vpop.eup %3260 }
 0x948   :  { %v3263_v63 = vpop.eup %3262  ;;  %v1552_v0 = vsel %vm459_vm5, %v3261_v62, 0.0 }
 0x949   :  { %1553 = vadd.xlane.f32.xlu1 %v1552_v0  ;;  %v1549_v1 = vsel %vm459_vm5, %v3263_v63, 0.0 }
 0x94a   :  { %1550 = vadd.xlane.f32.xlu0 %v1549_v1 }
 0x9d6   :  { %v1554_v10 = vpop.xlane.xlu1 %1553 }
 0x9d7   :  { %3264 = vrcp.f32 %v1554_v10  ;;  %v1551_v11 = vpop.xlane.xlu0 %1550 }
 0x9d8   :  { %3266 = vrcp.f32 %v1551_v11 }
 0x9e1   :  { %v3265_v13 = vpop.eup %3264 }
 0x9e2   :  { %v3267_v14 = vpop.eup %3266  ;;  %v1558_v16 = vmul.f32 %v3265_v13, %v3261_v62 }
 0x9e3   :  { %v1556_v15 = vmul.f32 %v3267_v14, %v3263_v63 }
 0x9e5   :  { %2984 = vmatprep.mubr.msk.f32.mxu1 %vm459_vm5, %v1556_v15 }
 0x9e6   :  { %2985 = vmatmul.mubr.msk.f32.vlgmr.msra.gmra.mrb[16].mxu1 %vm459_vm5, %v1558_v16 }
 0x9e7   :  { %3000 = vmatprep.mubr.msk.f32.mxu1 %vm115_vm0, %v3417_v5  ;;  %3179 = vmatpush3.bf16.msra.mxu1 %v3176_v22 }
 0x9e8   :  { %3181 = vmatprep.subr.bf16.mxu1 %v3180_v26 }
 0x9eb   :  { %3183 = vmatpush3.bf16.msra.mxu1 %v3180_v26 }
 0x9ec   :  { %3193 = vmatprep.subr.bf16.mxu1 %v3192_v50 }
 0x9ee   :  { %3001 = vmatmul.mubr.msk.f32.vlgmr.msra.gmra.mrb[18].mxu1 %vm115_vm0, %v3438_v12 }
 0x9ef   :  { %3022 = vmatprep.mubr.msk.f32.mxu1 %vm115_vm0, %v3417_v5  ;;  %3195 = vmatpush3.bf16.msra.mxu1 %v3192_v50  ;;  %v3222_v50 = vpack.c.bf16 %v2419_v49, %v2418_v47 }
 0x9f0   :  { %3197 = vmatprep.subr.bf16.mxu1 %v3196_v51 }
 0x9f3   :  { %3199 = vmatpush3.bf16.msra.mxu1 %v3196_v51  ;;  %v2421_v51 = vld [vmem:[%s3830_s15 + $0x28] sm:$0xff] }
 0x9f6   :  { %3023 = vmatmul.mubr.msk.f32.vlgmr.msra.gmra.mrb[20].mxu1 %vm115_vm0, %v3438_v12 }
 0xab9   :  { %v2986_v30 = vpop.f32.mrb[16].mxu1 }
 0xaba   :  { %v1631_v31 = vpop.f32.mrb[17].mxu1 }
 0xabb   :  { %2989 = vmatprep.mubr.msk.f32.mxu0 %vm371_vm1, %v1631_v31 }
 0xabc   :  { %2990 = vmatmul.mubr.msk.f32.vlgmr.msra.gmra.mrb[8].mxu0 %vm371_vm1, %v2986_v30 }
 0xabd   :  { %3187 = vmatpush3.bf16.msra.mxu0 %v3184_v19  ;;  %3011 = vmatprep.mubr.msk.f32.mxu0 %vm115_vm0, %v3417_v5  ;;  %v2693_v19 = vld [vmem:[%s3823_s8] ss:$0 sm:$0xff] }
 0xabe   :  { %3189 = vmatprep.subr.bf16.mxu0 %v3188_v32 }
 0xac1   :  { %3191 = vmatpush3.bf16.msra.mxu0 %v3188_v32  ;;  %v3002_v34 = vpop.f32.mrb[18].mxu1 }
 0xac2   :  { %v1810_v35 = vadd.f32 %v3002_v34, %v2665_v33  ;;  %v1804_v29 = vpop.f32.mrb[19].mxu1 }
 0xac3   :  { %v1805_v36 = vadd.f32 %v2665_v33, %v1804_v29 }
 0xac4   :  { %3012 = vmatmul.mubr.msk.f32.vlgmr.msra.gmra.mrb[14].mxu0 %vm115_vm0, %v3438_v12  ;;  %v1990_v46 = vmul.f32 0.35355338, %v1810_v35 }
 0xac5   :  { %v1989_v37 = vmul.f32 0.35355338, %v1805_v36 }
 0xac7   :  { %3029 = vmatprep.mubr.msk.f32.mxu0 %vm371_vm1, %v1989_v37 }
 0xac9   :  { %v3024_v2 = vpop.f32.mrb[20].mxu1 }
 0xaca   :  { %v1980_v4 = vpop.f32.mrb[21].mxu1  ;;  %v1986_v6 = vadd.f32 %v3024_v2, %v2681_v3 }
 0xacb   :  { %v1981_v7 = vadd.f32 %v2681_v3, %v1980_v4  ;;  %v2422_v3 = vld [vmem:[%s3830_s15 + $0x30] sm:$0xff]  ;;  %v2423_v4 = vld [vmem:[%s3830_s15 + $0x38] sm:$0xff] }
 0xacd   :  { %v3206_v8 = vpack.c.bf16 %v1986_v6, %v1981_v7  ;;  %v3230_v6 = vpack.c.bf16 %v2423_v4, %v2422_v3  ;;  %v2696_v7 = vld [vmem:[%s3829_s14] ss:$0 sm:$0xff] }
 0xacf   :  { %3207 = vmatprep.subr.bf16.mxu1 %v3206_v8 }
 0xad0   :  { %3209 = vmatpush3.bf16.msra.mxu1 %v3206_v8 }
 0xb97   :  { %v3013_v39 = vpop.f32.mrb[14].mxu0 }
 0xb98   :  { %v1898_v40 = vadd.f32 %v3013_v39, %v2673_v38  ;;  %v1892_v41 = vpop.f32.mrb[15].mxu0 }
 0xb99   :  { %v1893_v43 = vadd.f32 %v2673_v38, %v1892_v41  ;;  %v2323_v38 = vld [vmem:[%s3828_s13 + $0x8] sm:$0xff]  ;;  %v2325_v41 = vld [vmem:[%s3828_s13 + $0x18] sm:$0xff] }
 0xb9b   :  { %v3200_v45 = vpack.c.bf16 %v1898_v40, %v1893_v43  ;;  %v2324_v40 = vld [vmem:[%s3828_s13 + $0x10] sm:$0xff] }
 0xb9c   :  { %v3214_v43 = vpack.c.bf16 %v2325_v41, %v2324_v40  ;;  %v2702_v40 = vld [vmem:[%s3826_s11] ss:$0 sm:$0xff] }
 0xb9d   :  { %3202 = vmatprep.subr.msk.bf16.mxu0 %vm3455_vm2, %v3200_v45 }
 0xb9e   :  { %3205 = vmatpush3.bf16.xpose.msk.msra.mxu0 %vm3455_vm2, %v3200_v45  ;;  %v2416_v45 = vld [vmem:[%s3830_s15] sm:$0xff] }
 0xb9f   :  { %3039 = vmatprep.subr.mxu0 %v2690_v9 }
 0xba5   :  { %3030 = vmatmul.mubr.msk.f32.vlgmr.msra.gmra.mrb[16].mxu0 %vm371_vm1, %v1990_v46  ;;  %v2417_v46 = vld [vmem:[%s3830_s15 + $0x8] sm:$0xff] }
 0xba6   :  { %3040 = vmatpush3.msra.mxu0 %v2690_v9  ;;  %v3218_v48 = vpack.c.bf16 %v2417_v46, %v2416_v45  ;;  %v2703_v46 = vld [vmem:[%s3827_s12] ss:$0 sm:$0xff] }
 0xba8   :  { %3219 = vmatprep.subr.bf16.mxu0 %v3218_v48 }
 0xc78   :  { %v3031_v52 = vpop.f32.mrb[16].mxu0 }
 0xc79   :  { %v2075_v53 = vadd.f32 %v3031_v52, %v3482_v44  ;;  %v2069_v54 = vpop.f32.mrb[17].mxu0  ;;  %v3226_v52 = vpack.c.bf16 %v2421_v51, %v2420_v24 }
 0xc7a   :  { %v2070_v55 = vadd.f32 %v2069_v54, %v3480_v42 }
 0xc7b   :  { %v2081_v56 = vsel %vm459_vm5, %v2075_v53, -inf }
 0xc7c   :  { %2082 = vmax.xlane.f32.xlu1 %v2081_v56  ;;  %v2078_v57 = vsel %vm459_vm5, %v2070_v55, -inf }
 0xc7d   :  { %2079 = vmax.xlane.f32.xlu0 %v2078_v57 }
 0xd09   :  { %v2083_v58 = vpop.xlane.xlu1 %2082 }
 0xd0a   :  { %v2085_v59 = vsub.f32 %v2075_v53, %v2083_v58  ;;  %v2080_v60 = vpop.xlane.xlu0 %2079 }
 0xd0b   :  { %v2084_v61 = vsub.f32 %v2070_v55, %v2080_v60  ;;  %v2694_v60 = vld [vmem:[%s3824_s9] ss:$0 sm:$0xff] }
 0xd0c   :  { %v2088_v62 = vmul.f32 1.442695, %v2085_v59 }
 0xd0d   :  { %v2086_v63 = vmul.f32 1.442695, %v2084_v61 }
 0xd0e   :  { %3268 = vpow2.f32 %v2088_v62 }
 0xd0f   :  { %3270 = vpow2.f32 %v2086_v63 }
 0xd18   :  { %v3269_v0 = vpop.eup %3268 }
 0xd19   :  { %v3271_v1 = vpop.eup %3270  ;;  %v2093_v44 = vsel %vm459_vm5, %v3269_v0, 0.0 }
 0xd1a   :  { %2094 = vadd.xlane.f32.xlu1 %v2093_v44  ;;  %v2090_v42 = vsel %vm459_vm5, %v3271_v1, 0.0 }
 0xd1b   :  { %2091 = vadd.xlane.f32.xlu0 %v2090_v42 }
 0xda7   :  { %v2095_v10 = vpop.xlane.xlu1 %2094 }
 0xda8   :  { %3272 = vrcp.f32 %v2095_v10  ;;  %v2092_v11 = vpop.xlane.xlu0 %2091 }
 0xda9   :  { %3274 = vrcp.f32 %v2092_v11 }
 0xdb2   :  { %v3273_v13 = vpop.eup %3272 }
 0xdb3   :  { %v3275_v14 = vpop.eup %3274  ;;  %v2099_v16 = vmul.f32 %v3273_v13, %v3269_v0  ;;  %v2695_v0 = vld [vmem:[%s3825_s10] ss:$0 sm:$0xff] }
 0xdb4   :  { %v2097_v15 = vmul.f32 %v3275_v14, %v3271_v1 }
 0xdb6   :  { %3036 = vmatprep.mubr.msk.f32.mxu1 %vm459_vm5, %v2097_v15  ;;  %v2699_v15 = vld [vmem:[%s3831_s16] ss:$0 sm:$0xff] }
 0xdb7   :  { %3037 = vmatmul.mubr.msk.f32.vlgmr.msra.gmra.mrb[22].mxu1 %vm459_vm5, %v2099_v16 }
 0xe8a   :  { %v3038_v17 = vpop.f32.mrb[22].mxu1 }
 0xe8b   :  { %v2172_v18 = vpop.f32.mrb[23].mxu1 }
 0xe8c   :  { %3041 = vmatprep.mubr.msk.f32.mxu0 %vm371_vm1, %v2172_v18 }
 0xe8d   :  { %3042 = vmatmul.mubr.msk.f32.vlgmr.msra.gmra.mrb[8].mxu0 %vm371_vm1, %v3038_v17 }
 0xe8e   :  { %3221 = vmatpush3.bf16.msra.mxu0 %v3218_v48 }
 0xe8f   :  { %3223 = vmatprep.subr.bf16.mxu0 %v3222_v50 }
 0xe92   :  { %3225 = vmatpush3.bf16.msra.mxu0 %v3222_v50 }
 0xe93   :  { %3227 = vmatprep.subr.bf16.mxu0 %v3226_v52 }
 0xe96   :  { %3229 = vmatpush3.bf16.msra.mxu0 %v3226_v52 }
 0xe97   :  { %3231 = vmatprep.subr.bf16.mxu0 %v3230_v6 }
 0xe9a   :  { %3233 = vmatpush3.bf16.msra.mxu0 %v3230_v6 }
 0xf60   :  { %v3043_v20 = vpop.f32.mrb[8].mxu0 }
 0xf61   :  { %v2274_v21 = vadd.f32 %v3043_v20, %v2693_v19  ;;  %v2255_v22 = vpop.f32.mrb[9].mxu0 }
 0xf62   :  { %v2273_v23 = vadd.f32 %v2693_v19, %v2255_v22 }
 0xf63   :  { %v2276_v25 = vadd.f32 %v2274_v21, %v3438_v12 }
 0xf64   :  { %v2275_v26 = vadd.f32 %v2273_v23, %v3417_v5  ;;  %v2322_v5 = vld [vmem:[%s3828_s13] sm:$0xff] }
 0xf65   :  { %v2282_v27 = vsel %vm115_vm0, %v2276_v25, 0.0  ;;  %v3210_v39 = vpack.c.bf16 %v2323_v38, %v2322_v5 }
 0xf66   :  { %2283 = vadd.xlane.f32.xlu1 %v2282_v27  ;;  %v2279_v28 = vsel %vm115_vm0, %v2275_v26, 0.0 }
 0xf67   :  { %2280 = vadd.xlane.f32.xlu0 %v2279_v28  ;;  %3211 = vmatprep.subr.bf16.mxu1 %v3210_v39 }
 0xf68   :  { %3213 = vmatpush3.bf16.msra.mxu1 %v3210_v39 }
 0xf69   :  { %3215 = vmatprep.subr.bf16.mxu1 %v3214_v43 }
 0xf6c   :  { %3217 = vmatpush3.bf16.msra.mxu1 %v3214_v43 }
 0xff3   :  { %v2284_v30 = vpop.xlane.xlu1 %2283 }
 0xff4   :  { %v2287_v31 = vmul.f32 0.03125, %v2284_v30  ;;  %v2281_v32 = vpop.xlane.xlu0 %2280 }
 0xff5   :  { %v2286_v33 = vmul.f32 0.03125, %v2281_v32 }
 0xff6   :  { %v2289_v34 = vsub.f32 %v2276_v25, %v2287_v31 }
 0xff7   :  { %v2288_v35 = vsub.f32 %v2275_v26, %v2286_v33 }
 0xff8   :  { %v2291_v29 = vmul.f32 %v2289_v34, %v2289_v34 }
 0xff9   :  { %v2290_v36 = vmul.f32 %v2288_v35, %v2288_v35 }
 0xffa   :  { %v2295_v37 = vsel %vm115_vm0, %v2291_v29, 0.0 }
 0xffb   :  { %2296 = vadd.xlane.f32.xlu1 %v2295_v37  ;;  %v2292_v12 = vsel %vm115_vm0, %v2290_v36, 0.0 }
 0xffc   :  { %2293 = vadd.xlane.f32.xlu0 %v2292_v12 }
0x1088   :  { %v2297_v53 = vpop.xlane.xlu1 %2296 }
0x1089   :  { %v2299_v54 = vmul.f32 0.03125, %v2297_v53  ;;  %v2294_v55 = vpop.xlane.xlu0 %2293 }
0x108a   :  { %v2298_v56 = vmul.f32 0.03125, %v2294_v55 }
0x108b   :  { %v2301_v57 = vadd.f32 1e-05, %v2299_v54 }
0x108c   :  { %v2300_v58 = vadd.f32 1e-05, %v2298_v56 }
0x108d   :  { %3276 = vrsqrt.f32 %v2301_v57 }
0x108e   :  { %3278 = vrsqrt.f32 %v2300_v58 }
0x1097   :  { %v3277_v59 = vpop.eup %3276 }
0x1098   :  { %v3279_v61 = vpop.eup %3278  ;;  %v2305_v62 = vmul.f32 %v3277_v59, %v2289_v34 }
0x1099   :  { %v2304_v63 = vmul.f32 %v3279_v61, %v2288_v35 }
0x109a   :  { %v2313_v1 = vmul.f32 %v2694_v60, %v2305_v62 }
0x109b   :  { %v2312_v44 = vmul.f32 %v2694_v60, %v2304_v63 }
0x109c   :  { %v2321_v2 = vadd.f32 %v2695_v0, %v2313_v1 }
0x109d   :  { %v2320_v42 = vadd.f32 %v2695_v0, %v2312_v44 }
0x109f   :  { %3052 = vmatprep.mubr.msk.f32.mxu1 %vm115_vm0, %v2320_v42 }
0x10a0   :  { %3053 = vmatmul.mubr.msk.f32.vlgmr.msra.gmra.mrb[24].mxu1 %vm115_vm0, %v2321_v2 }
0x1173   :  { %v3054_v8 = vpop.f32.mrb[24].mxu1 }
0x1174   :  { %v2411_v9 = vadd.f32 %v3054_v8, %v2696_v7  ;;  %v2405_v10 = vpop.f32.mrb[25].mxu1 }
0x1175   :  { %v2406_v11 = vadd.f32 %v2696_v7, %v2405_v10 }
0x1176   :  { %v2415_v14 = vmax.f32 %v2411_v9, 0.0 }
0x1177   :  { %v2414_v13 = vmax.f32 %v2406_v11, 0.0 }
0x1179   :  { %3071 = vmatprep.mubr.msk.f32.mxu0 %vm2431_vm6, %v2414_v13 }
0x117a   :  { %3072 = vmatmul.mubr.msk.f32.vlgmr.msra.gmra.mrb[18].mxu0 %vm2431_vm6, %v2415_v14 }
0x124d   :  { %v3073_v16 = vpop.f32.mrb[18].mxu0 }
0x124e   :  { %v2510_v17 = vadd.f32 %v3073_v16, %v2699_v15  ;;  %v2504_v18 = vpop.f32.mrb[19].mxu0 }
0x124f   :  { %v2505_v19 = vadd.f32 %v2699_v15, %v2504_v18 }
0x1250   :  { %v2514_v20 = vadd.f32 %v2510_v17, %v2321_v2 }
0x1251   :  { %v2513_v21 = vadd.f32 %v2505_v19, %v2320_v42 }
0x1252   :  { %v2520_v22 = vsel %vm115_vm0, %v2514_v20, 0.0 }
0x1253   :  { %2521 = vadd.xlane.f32.xlu1 %v2520_v22  ;;  %v2517_v23 = vsel %vm115_vm0, %v2513_v21, 0.0 }
0x1254   :  { %2518 = vadd.xlane.f32.xlu0 %v2517_v23 }
0x12e0   :  { %v2522_v25 = vpop.xlane.xlu1 %2521 }
0x12e1   :  { %v2524_v26 = vmul.f32 0.03125, %v2522_v25  ;;  %v2519_v27 = vpop.xlane.xlu0 %2518 }
0x12e2   :  { %v2523_v28 = vmul.f32 0.03125, %v2519_v27 }
0x12e3   :  { %v2526_v30 = vsub.f32 %v2514_v20, %v2524_v26 }
0x12e4   :  { %v2525_v31 = vsub.f32 %v2513_v21, %v2523_v28 }
0x12e5   :  { %v2528_v32 = vmul.f32 %v2526_v30, %v2526_v30 }
0x12e6   :  { %v2527_v33 = vmul.f32 %v2525_v31, %v2525_v31 }
0x12e7   :  { %v2532_v34 = vsel %vm115_vm0, %v2528_v32, 0.0 }
0x12e8   :  { %2533 = vadd.xlane.f32.xlu1 %v2532_v34  ;;  %v2529_v35 = vsel %vm115_vm0, %v2527_v33, 0.0 }
0x12e9   :  { %2530 = vadd.xlane.f32.xlu0 %v2529_v35 }
0x1375   :  { %v2534_v29 = vpop.xlane.xlu1 %2533 }
0x1376   :  { %v2536_v36 = vmul.f32 0.03125, %v2534_v29  ;;  %v2531_v37 = vpop.xlane.xlu0 %2530 }
0x1377   :  { %v2535_v12 = vmul.f32 0.03125, %v2531_v37 }
0x1378   :  { %v2538_v5 = vadd.f32 1e-05, %v2536_v36 }
0x1379   :  { %v2537_v38 = vadd.f32 1e-05, %v2535_v12 }
0x137a   :  { %3280 = vrsqrt.f32 %v2538_v5 }
0x137b   :  { %3282 = vrsqrt.f32 %v2537_v38 }
0x1384   :  { %v3281_v39 = vpop.eup %3280 }
0x1385   :  { %v3283_v41 = vpop.eup %3282  ;;  %v2542_v43 = vmul.f32 %v3281_v39, %v2526_v30 }
0x1386   :  { %v2541_v45 = vmul.f32 %v3283_v41, %v2525_v31 }
0x1387   :  { %v2550_v47 = vmul.f32 %v2702_v40, %v2542_v43 }
0x1388   :  { %v2549_v48 = vmul.f32 %v2702_v40, %v2541_v45 }
0x1389   :  { %v2558_v49 = vadd.f32 %v2703_v46, %v2550_v47 }
0x138a   :  { %v2557_v50 = vadd.f32 %v2703_v46, %v2549_v48 }
0x138b   :  { %2560 = vst.msk [vmem:[#allocation2 + $0x8] sm:$0xff] %vm115_vm0, %v2558_v49 }
0x138c   :  { %2559 = vst.msk [vmem:[#allocation2] sm:$0xff] %vm115_vm0, %v2557_v50 }
0x138d   :  { %3295 = shalt.err (!%p3292_p4)
}
0x138e   :  { %s3296_s4 = scalar_lea.hbm %s3832_s17, 256 }
0x138f   :  { %p3297_p5 = scmp.ne.s32.totalorder %s3832_s17, %s3296_s4  ;;  %p3300_p6 = scmp.lt.u32.totalorder %s3296_s4, %s3832_s17 }
0x1391   :  { %p3302_p7 = pnand %p3300_p6, %p3297_p5 }
0x1393   :  { %3305 = shalt.err (!%p3302_p7)
}
0x1394   :  { %s3310_s13 = smov 128   ;;  %s3311_s5 = smov 8  }
0x1395   :  { %2572 = dma.vmem_to_hbm [thread:$0]  %s2567_s18, 256, %s3832_s17, [#allocation3], %s3310_s13, %s3310_s13, %s3311_s5  }
0x1396   :  { %3306 = dma.done.wait [#allocation3], 256  }
0x1397   :  { %3307 = vsyncadd [#allocation3], 4294967040 }
0x1398   :  { %2576 = vsyncpa [#allocation3], 1 }

</bundles_post_ra>
